<compile_context>
chip_gen: v5e
topology: v5e:2x2
jax: 0.10.0
libtpu: 0.0.40
codegen_flags: <defaults>
</compile_context>

<pallas_src>
import functools

import jax
import jax.numpy as jnp
from jax import lax
from jax.experimental import pallas as pl
from jax.experimental.pallas import tpu as pltpu


def _gat_fused_kernel(x_ref, nb_ref, w1_ref, b1_ref, al1_ref, ar1t_ref,
                      ssel_ref, w2_ref, b2_ref, al2_ref, ar2t_ref, o_ref,
                      *, num_heads, hidden, slope):
    """Fused 2-layer GAT forward.

    x_ref    : (N, Fin)        node features
    nb_ref   : (N, N)          additive mask bias: 0.0 on edges, -1e30 elsewhere
    w1_ref   : (Fin, H*D)      layer-1 weight, head-major columns (h*D + o)
    b1_ref   : (1, H*D)        layer-1 bias, head-major
    al1_ref  : (H*D, H)        block-diagonal a_l (per-head)
    ar1t_ref : (H, H*D)        transposed block-diagonal a_r
    ssel_ref : (H*N, H)        block-ones selector: ssel[h*N+j, h] = 1
    w2_ref   : (H*D, Cpad)     layer-2 weight, rows permuted head-major, padded
    b2_ref   : (1, Cpad)       layer-2 bias (zero-padded)
    al2_ref  : (Cpad, 1)       layer-2 a_l (zero-padded)
    ar2t_ref : (1, Cpad)       layer-2 a_r transposed (zero-padded)
    o_ref    : (N, Cpad)       output (lane-dense, padded)
    """
    f32 = jnp.float32
    x = x_ref[...]                                                   # (N, Fin)
    neg_bias = nb_ref[...]                                           # (N, N)
    n = x.shape[0]

    # ---------------- layer 1: all heads, one wide projection ----------------
    z1 = jnp.dot(x, w1_ref[...], preferred_element_type=f32) + b1_ref[...]  # (N, H*D)
    e_l = jnp.dot(z1, al1_ref[...], preferred_element_type=f32)             # (N, H)
    # (H, N) lane-dense rows (A @ B^T pattern), no per-head column->row relayout.
    e_rT = lax.dot_general(ar1t_ref[...], z1, (((1,), (1,)), ((), ())),
                           preferred_element_type=f32)                      # (H, N)

    # Pack all heads along the lane axis: e_packed[:, h*N+j] = e_l[i,h]+e_r[j,h]+bias[i,j].
    # Masked entries become ~-1e30 so exp() underflows to exactly 0 later.
    e_packed = jnp.concatenate(
        [e_l[:, h:h + 1] + e_rT[h:h + 1, :] + neg_bias
         for h in range(num_heads)], axis=1)                                # (N, H*N)
    a_packed = jnp.maximum(e_packed, slope * e_packed)                      # leaky_relu
    # Single row-wide max across all heads: exact by softmax shift-invariance
    # (any per-row constant cancels); only risk is exp underflow if per-head
    # logit spread exceeds ~87, which does not occur at these scales.
    m = jnp.max(a_packed, axis=1, keepdims=True)                            # (N, 1)
    p_packed = jnp.exp(a_packed - m)                                        # masked -> 0
    # per-head row sums in one block-diagonal-ones MXU matmul
    denom = jnp.dot(p_packed, ssel_ref[...], preferred_element_type=f32)    # (N, H)
    inv = pl.reciprocal(denom, approx=True)                                 # (N, H)

    # per-head bspmm (block-diagonal structure), normalize per head
    parts = []
    for h in range(num_heads):                       # static unroll over heads
        p_h = p_packed[:, h * n:(h + 1) * n]         # (N, N)
        z_h = z1[:, h * hidden:(h + 1) * hidden]     # (N, D)
        parts.append(jnp.dot(p_h, z_h, preferred_element_type=f32)
                     * inv[:, h:h + 1])              # (N, D)
    out1 = jnp.concatenate(parts, axis=1)            # (N, H*D) head-major
    # ELU (safe exp: no inf on the positive branch)
    out1 = jnp.where(out1 > 0, out1, jnp.exp(jnp.minimum(out1, 0.0)) - 1.0)

    # Single wide K=H*D matmul for the layer-2 projection (was 8 K=8 matmuls).
    z2 = jnp.dot(out1, w2_ref[...], preferred_element_type=f32) + b2_ref[...]  # (N, Cpad)

    # ---------------- layer 2: single head ----------------
    e_l2 = jnp.dot(z2, al2_ref[...], preferred_element_type=f32)     # (N, 1)
    e_r2T = lax.dot_general(ar2t_ref[...], z2, (((1,), (1,)), ((), ())),
                            preferred_element_type=f32)              # (1, N)
    e2 = e_l2 + e_r2T
    a2 = jnp.maximum(e2, slope * e2)
    logits2 = a2 + neg_bias
    m2 = jnp.max(logits2, axis=1, keepdims=True)
    p2 = jnp.exp(logits2 - m2)
    denom2 = jnp.sum(p2, axis=1, keepdims=True)
    att2 = p2 * pl.reciprocal(denom2, approx=True)
    # mean over the size-1 head axis of the reference is the identity.
    o_ref[...] = jnp.dot(att2, z2, preferred_element_type=f32)       # (N, Cpad)


def gat_forward(adj, x, params):
    """Full GAT forward: in_conv -> ELU -> flatten -> out_conv -> mean(-1)."""
    p1, p2 = params["in_conv"], params["out_conv"]
    N, fin = x.shape
    D, H = p1["a_l"].shape                 # hidden size, num heads (layer 1)
    C = p2["a_l"].shape[0]                 # output classes (layer 2, 1 head)
    C_PAD = 128                            # lane-friendly output width

    # ---- layer-1 params, head-major flat layout (column index = h*D + o) ----
    # PyTorch: W1(x).view(N, D, H) => flat column index = o*H + h.
    w1 = p1["w"].reshape(fin, D, H).transpose(0, 2, 1).reshape(fin, H * D)
    b1 = p1["b"].reshape(D, H).transpose(1, 0).reshape(1, H * D)
    eye_h = jnp.eye(H, dtype=jnp.float32)
    al1 = (p1["a_l"].T[:, :, None] * eye_h[:, None, :]).reshape(H * D, H)
    ar1t = (p1["a_r"].T[:, :, None] * eye_h[:, None, :]).reshape(H * D, H).T  # (H, H*D)

    # block-ones selector for per-head packed row sums: ssel[h*N+j, h] = 1
    ssel = jnp.repeat(jnp.eye(H, dtype=jnp.float32), N, axis=0)       # (H*N, H)

    # ---- layer-2 params: permute rows to head-major, zero-pad width to 128 ----
    w2 = p2["w"].reshape(D, H, C).transpose(1, 0, 2).reshape(H * D, C)
    w2 = jnp.pad(w2, ((0, 0), (0, C_PAD - C)))
    b2 = jnp.pad(p2["b"], (0, C_PAD - C)).reshape(1, C_PAD)
    al2 = jnp.pad(p2["a_l"], ((0, C_PAD - C), (0, 0)))                # (Cpad, 1)
    ar2t = jnp.pad(p2["a_r"], ((0, C_PAD - C), (0, 0))).T             # (1, Cpad)

    # additive softmax mask bias, computed once and shared by both layers
    neg_bias = jnp.where(adj > 0.0, 0.0, -1e30).astype(jnp.float32)

    kernel = functools.partial(_gat_fused_kernel, num_heads=H, hidden=D,
                               slope=0.01)
    out = pl.pallas_call(
        kernel,
        out_shape=jax.ShapeDtypeStruct((N, C_PAD), jnp.float32),
        grid=(1,),
        in_specs=[
            pl.BlockSpec((N, fin), lambda i: (0, 0)),
            pl.BlockSpec((N, N), lambda i: (0, 0)),
            pl.BlockSpec((fin, H * D), lambda i: (0, 0)),
            pl.BlockSpec((1, H * D), lambda i: (0, 0)),
            pl.BlockSpec((H * D, H), lambda i: (0, 0)),
            pl.BlockSpec((H, H * D), lambda i: (0, 0)),
            pl.BlockSpec((H * N, H), lambda i: (0, 0)),
            pl.BlockSpec((H * D, C_PAD), lambda i: (0, 0)),
            pl.BlockSpec((1, C_PAD), lambda i: (0, 0)),
            pl.BlockSpec((C_PAD, 1), lambda i: (0, 0)),
            pl.BlockSpec((1, C_PAD), lambda i: (0, 0)),
        ],
        out_specs=pl.BlockSpec((N, C_PAD), lambda i: (0, 0)),
        compiler_params=pltpu.CompilerParams(dimension_semantics=("arbitrary",)),
    )(x, neg_bias, w1, b1, al1, ar1t, ssel, w2, b2, al2, ar2t)
    return out[:, :C]


# --------------------- pure-JAX reference (for sanity check) ---------------------
def _ref_gat_conv(x, adj, w, b, a_l, a_r, out_size, num_heads):
    N = x.shape[0]
    z = (x @ w + b).reshape(N, out_size, num_heads)
    e_l = jnp.sum(z * a_l[None], axis=1)                    # (N, H)
    e_r = jnp.sum(z * a_r[None], axis=1)                    # (N, H)
    e = e_l[:, None, :] + e_r[None, :, :]                   # (N, N, H)
    a = jnp.where(e > 0, e, 0.01 * e)
    mask = (adj > 0.0)[:, :, None]
    logits = jnp.where(mask, a, -1e30)
    m = jnp.max(logits, axis=1, keepdims=True)
    p = jnp.where(mask, jnp.exp(logits - m), 0.0)
    att = p / jnp.sum(p, axis=1, keepdims=True)
    return jnp.einsum('ijh,jdh->idh', att, z)               # (N, D, H)


def _ref_gat(adj, x, params):
    p1, p2 = params["in_conv"], params["out_conv"]
    hid, hds = p1["a_l"].shape
    h = _ref_gat_conv(x, adj, p1["w"], p1["b"], p1["a_l"], p1["a_r"], hid, hds)
    h = jnp.where(h > 0, h, jnp.exp(h) - 1.0)
    z = h.reshape(x.shape[0], hid * hds)
    c = p2["a_l"].shape[0]
    o = _ref_gat_conv(z, adj, p2["w"], p2["b"], p2["a_l"], p2["a_r"], c, 1)
    return jnp.mean(o, axis=-1)


# --------------------------------- parameter init ---------------------------------
def _xavier_normal(key, shape, fan_in, fan_out, gain):
    std = gain * (2.0 / (fan_in + fan_out)) ** 0.5
    return std * jax.random.normal(key, shape, dtype=jnp.float32)


def init_params(key, in_size, hidden_size, num_heads, out_size):
    gain = 2.0 ** 0.5  # calculate_gain('relu')
    k = jax.random.split(key, 8)
    p1 = {
        "w":   _xavier_normal(k[0], (in_size, hidden_size * num_heads),
                              in_size, hidden_size * num_heads, gain),
        "b":   (1.0 / in_size ** 0.5) * jax.random.uniform(
                   k[1], (hidden_size * num_heads,), jnp.float32, -1.0, 1.0),
        "a_l": _xavier_normal(k[2], (hidden_size, num_heads),
                              hidden_size * num_heads, num_heads, gain),
        "a_r": _xavier_normal(k[3], (hidden_size, num_heads),
                              hidden_size * num_heads, num_heads, gain),
    }
    in2 = hidden_size * num_heads
    p2 = {
        "w":   _xavier_normal(k[4], (in2, out_size), in2, out_size, gain),
        "b":   (1.0 / in2 ** 0.5) * jax.random.uniform(
                   k[5], (out_size,), jnp.float32, -1.0, 1.0),
        "a_l": _xavier_normal(k[6], (out_size, 1), out_size, 1, gain),
        "a_r": _xavier_normal(k[7], (out_size, 1), out_size, 1, gain),
    }
    return {"in_conv": p1, "out_conv": p2}


if __name__ == "__main__":
    N, in_size = 32, 16          # N nodes, in_size input features
    hidden_size, num_heads, out_size = 8, 8, 4

    key = jax.random.PRNGKey(0)
    kx, ka, kp = jax.random.split(key, 3)

    x = jax.random.normal(kx, (N, in_size), dtype=jnp.float32)
    # random adjacency with self loops (A_hat = A + I), symmetric.
    # Self loops guarantee every softmax row has >=1 edge (no zero denom).
    a = (jax.random.uniform(ka, (N, N)) < 0.2).astype(jnp.float32)
    adj = jnp.clip(a + a.T + jnp.eye(N, dtype=jnp.float32), 0.0, 1.0)

    params = init_params(kp, in_size, hidden_size, num_heads, out_size)

    out = jax.jit(gat_forward)(adj, x, params)
    out = jax.block_until_ready(out)
    assert out.shape == (N, out_size)

    ref = _ref_gat(adj, x, params)
    assert jnp.allclose(out, ref, rtol=5e-2, atol=5e-2), "mismatch vs JAX reference"

    print("KERNEL_OK")
</pallas_src>

<mosaic_0001>
module attributes {stable_mosaic.version = 11 : i64} {
  func.func @_gat_fused_kernel(%arg0: i32, %arg1: memref<32x16xf32, #tpu.memory_space<vmem>>, %arg2: memref<32x32xf32, #tpu.memory_space<vmem>>, %arg3: memref<16x64xf32, #tpu.memory_space<vmem>>, %arg4: memref<1x64xf32, #tpu.memory_space<vmem>>, %arg5: memref<64x8xf32, #tpu.memory_space<vmem>>, %arg6: memref<8x64xf32, #tpu.memory_space<vmem>>, %arg7: memref<256x8xf32, #tpu.memory_space<vmem>>, %arg8: memref<64x128xf32, #tpu.memory_space<vmem>>, %arg9: memref<1x128xf32, #tpu.memory_space<vmem>>, %arg10: memref<128x1xf32, #tpu.memory_space<vmem>>, %arg11: memref<1x128xf32, #tpu.memory_space<vmem>>, %arg12: memref<32x128xf32, #tpu.memory_space<vmem>>) attributes {dimension_semantics = [#tpu.dimension_semantics<arbitrary>], iteration_bounds = array<i64: 1>, scalar_prefetch = 0 : i64, scratch_operands = 0 : i64, tpu.core_type = #tpu.core_type<tc>, window_params = [{pipeline_mode = #tpu.pipeline_mode<synchronous>, transform_indices = @transform_0, window_bounds = array<i64: 32, 16>}, {pipeline_mode = #tpu.pipeline_mode<synchronous>, transform_indices = @transform_1, window_bounds = array<i64: 32, 32>}, {pipeline_mode = #tpu.pipeline_mode<synchronous>, transform_indices = @transform_2, window_bounds = array<i64: 16, 64>}, {pipeline_mode = #tpu.pipeline_mode<synchronous>, transform_indices = @transform_3, window_bounds = array<i64: 1, 64>}, {pipeline_mode = #tpu.pipeline_mode<synchronous>, transform_indices = @transform_4, window_bounds = array<i64: 64, 8>}, {pipeline_mode = #tpu.pipeline_mode<synchronous>, transform_indices = @transform_5, window_bounds = array<i64: 8, 64>}, {pipeline_mode = #tpu.pipeline_mode<synchronous>, transform_indices = @transform_6, window_bounds = array<i64: 256, 8>}, {pipeline_mode = #tpu.pipeline_mode<synchronous>, transform_indices = @transform_7, window_bounds = array<i64: 64, 128>}, {pipeline_mode = #tpu.pipeline_mode<synchronous>, transform_indices = @transform_8, window_bounds = array<i64: 1, 128>}, {pipeline_mode = #tpu.pipeline_mode<synchronous>, transform_indices = @transform_9, window_bounds = array<i64: 128, 1>}, {pipeline_mode = #tpu.pipeline_mode<synchronous>, transform_indices = @transform_10, window_bounds = array<i64: 1, 128>}, {pipeline_mode = #tpu.pipeline_mode<synchronous>, transform_indices = @transform_11, window_bounds = array<i64: 32, 128>}]} {
    %c0 = arith.constant 0 : index
    %c0_0 = arith.constant 0 : index
    %0 = vector.load %arg1[%c0, %c0_0] : memref<32x16xf32, #tpu.memory_space<vmem>>, vector<32x16xf32>
    %c0_1 = arith.constant 0 : index
    %c0_2 = arith.constant 0 : index
    %1 = vector.load %arg2[%c0_1, %c0_2] : memref<32x32xf32, #tpu.memory_space<vmem>>, vector<32x32xf32>
    %c0_3 = arith.constant 0 : index
    %c0_4 = arith.constant 0 : index
    %2 = vector.load %arg3[%c0_3, %c0_4] : memref<16x64xf32, #tpu.memory_space<vmem>>, vector<16x64xf32>
    %cst = arith.constant dense<0.000000e+00> : vector<32x64xf32>
    %3 = tpu.matmul %0, %2, %cst {dimension_numbers = #tpu.dot_dimension_numbers<[1], [0], [0], [1], [0, 0, 1, 1], [], []>} : vector<32x16xf32>, vector<16x64xf32>, vector<32x64xf32> -> vector<32x64xf32>
    %c0_5 = arith.constant 0 : index
    %c0_6 = arith.constant 0 : index
    %4 = vector.load %arg4[%c0_5, %c0_6] : memref<1x64xf32, #tpu.memory_space<vmem>>, vector<1x64xf32>
    %5 = vector.broadcast %4 : vector<1x64xf32> to vector<32x64xf32>
    %6 = arith.addf %3, %5 : vector<32x64xf32>
    %c0_7 = arith.constant 0 : index
    %c0_8 = arith.constant 0 : index
    %7 = vector.load %arg5[%c0_7, %c0_8] : memref<64x8xf32, #tpu.memory_space<vmem>>, vector<64x8xf32>
    %cst_9 = arith.constant dense<0.000000e+00> : vector<32x8xf32>
    %8 = tpu.matmul %6, %7, %cst_9 {dimension_numbers = #tpu.dot_dimension_numbers<[1], [0], [0], [1], [0, 0, 1, 1], [], []>} : vector<32x64xf32>, vector<64x8xf32>, vector<32x8xf32> -> vector<32x8xf32>
    %c0_10 = arith.constant 0 : index
    %c0_11 = arith.constant 0 : index
    %9 = vector.load %arg6[%c0_10, %c0_11] : memref<8x64xf32, #tpu.memory_space<vmem>>, vector<8x64xf32>
    %cst_12 = arith.constant dense<0.000000e+00> : vector<8x32xf32>
    %10 = tpu.matmul %9, %6, %cst_12 {dimension_numbers = #tpu.dot_dimension_numbers<[1], [1], [0], [0], [0, 0, 1, 0], [], []>} : vector<8x64xf32>, vector<32x64xf32>, vector<8x32xf32> -> vector<8x32xf32>
    %11 = vector.extract_strided_slice %8 {offsets = [0, 0], sizes = [32, 1], strides = [1, 1]} : vector<32x8xf32> to vector<32x1xf32>
    %12 = vector.extract_strided_slice %10 {offsets = [0, 0], sizes = [1, 32], strides = [1, 1]} : vector<8x32xf32> to vector<1x32xf32>
    %13 = vector.broadcast %11 : vector<32x1xf32> to vector<32x32xf32>
    %14 = vector.broadcast %12 : vector<1x32xf32> to vector<32x32xf32>
    %15 = arith.addf %13, %14 : vector<32x32xf32>
    %16 = arith.addf %15, %1 : vector<32x32xf32>
    %17 = vector.extract_strided_slice %8 {offsets = [0, 1], sizes = [32, 1], strides = [1, 1]} : vector<32x8xf32> to vector<32x1xf32>
    %18 = vector.extract_strided_slice %10 {offsets = [1, 0], sizes = [1, 32], strides = [1, 1]} : vector<8x32xf32> to vector<1x32xf32>
    %19 = vector.broadcast %17 : vector<32x1xf32> to vector<32x32xf32>
    %20 = vector.broadcast %18 : vector<1x32xf32> to vector<32x32xf32>
    %21 = arith.addf %19, %20 : vector<32x32xf32>
    %22 = arith.addf %21, %1 : vector<32x32xf32>
    %23 = vector.extract_strided_slice %8 {offsets = [0, 2], sizes = [32, 1], strides = [1, 1]} : vector<32x8xf32> to vector<32x1xf32>
    %24 = vector.extract_strided_slice %10 {offsets = [2, 0], sizes = [1, 32], strides = [1, 1]} : vector<8x32xf32> to vector<1x32xf32>
    %25 = vector.broadcast %23 : vector<32x1xf32> to vector<32x32xf32>
    %26 = vector.broadcast %24 : vector<1x32xf32> to vector<32x32xf32>
    %27 = arith.addf %25, %26 : vector<32x32xf32>
    %28 = arith.addf %27, %1 : vector<32x32xf32>
    %29 = vector.extract_strided_slice %8 {offsets = [0, 3], sizes = [32, 1], strides = [1, 1]} : vector<32x8xf32> to vector<32x1xf32>
    %30 = vector.extract_strided_slice %10 {offsets = [3, 0], sizes = [1, 32], strides = [1, 1]} : vector<8x32xf32> to vector<1x32xf32>
    %31 = vector.broadcast %29 : vector<32x1xf32> to vector<32x32xf32>
    %32 = vector.broadcast %30 : vector<1x32xf32> to vector<32x32xf32>
    %33 = arith.addf %31, %32 : vector<32x32xf32>
    %34 = arith.addf %33, %1 : vector<32x32xf32>
    %35 = vector.extract_strided_slice %8 {offsets = [0, 4], sizes = [32, 1], strides = [1, 1]} : vector<32x8xf32> to vector<32x1xf32>
    %36 = vector.extract_strided_slice %10 {offsets = [4, 0], sizes = [1, 32], strides = [1, 1]} : vector<8x32xf32> to vector<1x32xf32>
    %37 = vector.broadcast %35 : vector<32x1xf32> to vector<32x32xf32>
    %38 = vector.broadcast %36 : vector<1x32xf32> to vector<32x32xf32>
    %39 = arith.addf %37, %38 : vector<32x32xf32>
    %40 = arith.addf %39, %1 : vector<32x32xf32>
    %41 = vector.extract_strided_slice %8 {offsets = [0, 5], sizes = [32, 1], strides = [1, 1]} : vector<32x8xf32> to vector<32x1xf32>
    %42 = vector.extract_strided_slice %10 {offsets = [5, 0], sizes = [1, 32], strides = [1, 1]} : vector<8x32xf32> to vector<1x32xf32>
    %43 = vector.broadcast %41 : vector<32x1xf32> to vector<32x32xf32>
    %44 = vector.broadcast %42 : vector<1x32xf32> to vector<32x32xf32>
    %45 = arith.addf %43, %44 : vector<32x32xf32>
    %46 = arith.addf %45, %1 : vector<32x32xf32>
    %47 = vector.extract_strided_slice %8 {offsets = [0, 6], sizes = [32, 1], strides = [1, 1]} : vector<32x8xf32> to vector<32x1xf32>
    %48 = vector.extract_strided_slice %10 {offsets = [6, 0], sizes = [1, 32], strides = [1, 1]} : vector<8x32xf32> to vector<1x32xf32>
    %49 = vector.broadcast %47 : vector<32x1xf32> to vector<32x32xf32>
    %50 = vector.broadcast %48 : vector<1x32xf32> to vector<32x32xf32>
    %51 = arith.addf %49, %50 : vector<32x32xf32>
    %52 = arith.addf %51, %1 : vector<32x32xf32>
    %53 = vector.extract_strided_slice %8 {offsets = [0, 7], sizes = [32, 1], strides = [1, 1]} : vector<32x8xf32> to vector<32x1xf32>
    %54 = vector.extract_strided_slice %10 {offsets = [7, 0], sizes = [1, 32], strides = [1, 1]} : vector<8x32xf32> to vector<1x32xf32>
    %55 = vector.broadcast %53 : vector<32x1xf32> to vector<32x32xf32>
    %56 = vector.broadcast %54 : vector<1x32xf32> to vector<32x32xf32>
    %57 = arith.addf %55, %56 : vector<32x32xf32>
    %58 = arith.addf %57, %1 : vector<32x32xf32>
    %59 = tpu.concatenate %16, %22, %28, %34, %40, %46, %52, %58 in 1 : vector<32x32xf32>, vector<32x32xf32>, vector<32x32xf32>, vector<32x32xf32>, vector<32x32xf32>, vector<32x32xf32>, vector<32x32xf32>, vector<32x32xf32> -> vector<32x256xf32>
    %cst_13 = arith.constant 0.00999999977 : f32
    %60 = vector.broadcast %cst_13 : f32 to vector<32x256xf32>
    %61 = arith.mulf %60, %59 : vector<32x256xf32>
    %62 = arith.maximumf %59, %61 : vector<32x256xf32>
    %cst_14 = arith.constant dense<0xFF800000> : vector<32xf32>
    %63 = vector.multi_reduction <maximumf>, %62, %cst_14 [1] : vector<32x256xf32> to vector<32xf32>
    %64 = vector.shape_cast %63 : vector<32xf32> to vector<32x1xf32>
    %65 = vector.broadcast %64 : vector<32x1xf32> to vector<32x256xf32>
    %66 = arith.subf %62, %65 : vector<32x256xf32>
    %67 = math.exp %66 : vector<32x256xf32>
    %c0_15 = arith.constant 0 : index
    %c0_16 = arith.constant 0 : index
    %68 = vector.load %arg7[%c0_15, %c0_16] : memref<256x8xf32, #tpu.memory_space<vmem>>, vector<256x8xf32>
    %cst_17 = arith.constant dense<0.000000e+00> : vector<32x8xf32>
    %69 = tpu.matmul %67, %68, %cst_17 {dimension_numbers = #tpu.dot_dimension_numbers<[1], [0], [0], [1], [0, 0, 1, 1], [], []>} : vector<32x256xf32>, vector<256x8xf32>, vector<32x8xf32> -> vector<32x8xf32>
    %70 = tpu.reciprocal %69 {approx = true} : vector<32x8xf32> -> vector<32x8xf32>
    %71 = vector.extract_strided_slice %67 {offsets = [0, 0], sizes = [32, 32], strides = [1, 1]} : vector<32x256xf32> to vector<32x32xf32>
    %72 = vector.extract_strided_slice %6 {offsets = [0, 0], sizes = [32, 8], strides = [1, 1]} : vector<32x64xf32> to vector<32x8xf32>
    %cst_18 = arith.constant dense<0.000000e+00> : vector<32x8xf32>
    %73 = tpu.matmul %71, %72, %cst_18 {dimension_numbers = #tpu.dot_dimension_numbers<[1], [0], [0], [1], [0, 0, 1, 1], [], []>} : vector<32x32xf32>, vector<32x8xf32>, vector<32x8xf32> -> vector<32x8xf32>
    %74 = vector.extract_strided_slice %70 {offsets = [0, 0], sizes = [32, 1], strides = [1, 1]} : vector<32x8xf32> to vector<32x1xf32>
    %75 = vector.broadcast %74 : vector<32x1xf32> to vector<32x8xf32>
    %76 = arith.mulf %73, %75 : vector<32x8xf32>
    %77 = vector.extract_strided_slice %67 {offsets = [0, 32], sizes = [32, 32], strides = [1, 1]} : vector<32x256xf32> to vector<32x32xf32>
    %78 = vector.extract_strided_slice %6 {offsets = [0, 8], sizes = [32, 8], strides = [1, 1]} : vector<32x64xf32> to vector<32x8xf32>
    %cst_19 = arith.constant dense<0.000000e+00> : vector<32x8xf32>
    %79 = tpu.matmul %77, %78, %cst_19 {dimension_numbers = #tpu.dot_dimension_numbers<[1], [0], [0], [1], [0, 0, 1, 1], [], []>} : vector<32x32xf32>, vector<32x8xf32>, vector<32x8xf32> -> vector<32x8xf32>
    %80 = vector.extract_strided_slice %70 {offsets = [0, 1], sizes = [32, 1], strides = [1, 1]} : vector<32x8xf32> to vector<32x1xf32>
    %81 = vector.broadcast %80 : vector<32x1xf32> to vector<32x8xf32>
    %82 = arith.mulf %79, %81 : vector<32x8xf32>
    %83 = vector.extract_strided_slice %67 {offsets = [0, 64], sizes = [32, 32], strides = [1, 1]} : vector<32x256xf32> to vector<32x32xf32>
    %84 = vector.extract_strided_slice %6 {offsets = [0, 16], sizes = [32, 8], strides = [1, 1]} : vector<32x64xf32> to vector<32x8xf32>
    %cst_20 = arith.constant dense<0.000000e+00> : vector<32x8xf32>
    %85 = tpu.matmul %83, %84, %cst_20 {dimension_numbers = #tpu.dot_dimension_numbers<[1], [0], [0], [1], [0, 0, 1, 1], [], []>} : vector<32x32xf32>, vector<32x8xf32>, vector<32x8xf32> -> vector<32x8xf32>
    %86 = vector.extract_strided_slice %70 {offsets = [0, 2], sizes = [32, 1], strides = [1, 1]} : vector<32x8xf32> to vector<32x1xf32>
    %87 = vector.broadcast %86 : vector<32x1xf32> to vector<32x8xf32>
    %88 = arith.mulf %85, %87 : vector<32x8xf32>
    %89 = vector.extract_strided_slice %67 {offsets = [0, 96], sizes = [32, 32], strides = [1, 1]} : vector<32x256xf32> to vector<32x32xf32>
    %90 = vector.extract_strided_slice %6 {offsets = [0, 24], sizes = [32, 8], strides = [1, 1]} : vector<32x64xf32> to vector<32x8xf32>
    %cst_21 = arith.constant dense<0.000000e+00> : vector<32x8xf32>
    %91 = tpu.matmul %89, %90, %cst_21 {dimension_numbers = #tpu.dot_dimension_numbers<[1], [0], [0], [1], [0, 0, 1, 1], [], []>} : vector<32x32xf32>, vector<32x8xf32>, vector<32x8xf32> -> vector<32x8xf32>
    %92 = vector.extract_strided_slice %70 {offsets = [0, 3], sizes = [32, 1], strides = [1, 1]} : vector<32x8xf32> to vector<32x1xf32>
    %93 = vector.broadcast %92 : vector<32x1xf32> to vector<32x8xf32>
    %94 = arith.mulf %91, %93 : vector<32x8xf32>
    %95 = vector.extract_strided_slice %67 {offsets = [0, 128], sizes = [32, 32], strides = [1, 1]} : vector<32x256xf32> to vector<32x32xf32>
    %96 = vector.extract_strided_slice %6 {offsets = [0, 32], sizes = [32, 8], strides = [1, 1]} : vector<32x64xf32> to vector<32x8xf32>
    %cst_22 = arith.constant dense<0.000000e+00> : vector<32x8xf32>
    %97 = tpu.matmul %95, %96, %cst_22 {dimension_numbers = #tpu.dot_dimension_numbers<[1], [0], [0], [1], [0, 0, 1, 1], [], []>} : vector<32x32xf32>, vector<32x8xf32>, vector<32x8xf32> -> vector<32x8xf32>
    %98 = vector.extract_strided_slice %70 {offsets = [0, 4], sizes = [32, 1], strides = [1, 1]} : vector<32x8xf32> to vector<32x1xf32>
    %99 = vector.broadcast %98 : vector<32x1xf32> to vector<32x8xf32>
    %100 = arith.mulf %97, %99 : vector<32x8xf32>
    %101 = vector.extract_strided_slice %67 {offsets = [0, 160], sizes = [32, 32], strides = [1, 1]} : vector<32x256xf32> to vector<32x32xf32>
    %102 = vector.extract_strided_slice %6 {offsets = [0, 40], sizes = [32, 8], strides = [1, 1]} : vector<32x64xf32> to vector<32x8xf32>
    %cst_23 = arith.constant dense<0.000000e+00> : vector<32x8xf32>
    %103 = tpu.matmul %101, %102, %cst_23 {dimension_numbers = #tpu.dot_dimension_numbers<[1], [0], [0], [1], [0, 0, 1, 1], [], []>} : vector<32x32xf32>, vector<32x8xf32>, vector<32x8xf32> -> vector<32x8xf32>
    %104 = vector.extract_strided_slice %70 {offsets = [0, 5], sizes = [32, 1], strides = [1, 1]} : vector<32x8xf32> to vector<32x1xf32>
    %105 = vector.broadcast %104 : vector<32x1xf32> to vector<32x8xf32>
    %106 = arith.mulf %103, %105 : vector<32x8xf32>
    %107 = vector.extract_strided_slice %67 {offsets = [0, 192], sizes = [32, 32], strides = [1, 1]} : vector<32x256xf32> to vector<32x32xf32>
    %108 = vector.extract_strided_slice %6 {offsets = [0, 48], sizes = [32, 8], strides = [1, 1]} : vector<32x64xf32> to vector<32x8xf32>
    %cst_24 = arith.constant dense<0.000000e+00> : vector<32x8xf32>
    %109 = tpu.matmul %107, %108, %cst_24 {dimension_numbers = #tpu.dot_dimension_numbers<[1], [0], [0], [1], [0, 0, 1, 1], [], []>} : vector<32x32xf32>, vector<32x8xf32>, vector<32x8xf32> -> vector<32x8xf32>
    %110 = vector.extract_strided_slice %70 {offsets = [0, 6], sizes = [32, 1], strides = [1, 1]} : vector<32x8xf32> to vector<32x1xf32>
    %111 = vector.broadcast %110 : vector<32x1xf32> to vector<32x8xf32>
    %112 = arith.mulf %109, %111 : vector<32x8xf32>
    %113 = vector.extract_strided_slice %67 {offsets = [0, 224], sizes = [32, 32], strides = [1, 1]} : vector<32x256xf32> to vector<32x32xf32>
    %114 = vector.extract_strided_slice %6 {offsets = [0, 56], sizes = [32, 8], strides = [1, 1]} : vector<32x64xf32> to vector<32x8xf32>
    %cst_25 = arith.constant dense<0.000000e+00> : vector<32x8xf32>
    %115 = tpu.matmul %113, %114, %cst_25 {dimension_numbers = #tpu.dot_dimension_numbers<[1], [0], [0], [1], [0, 0, 1, 1], [], []>} : vector<32x32xf32>, vector<32x8xf32>, vector<32x8xf32> -> vector<32x8xf32>
    %116 = vector.extract_strided_slice %70 {offsets = [0, 7], sizes = [32, 1], strides = [1, 1]} : vector<32x8xf32> to vector<32x1xf32>
    %117 = vector.broadcast %116 : vector<32x1xf32> to vector<32x8xf32>
    %118 = arith.mulf %115, %117 : vector<32x8xf32>
    %119 = tpu.concatenate %76, %82, %88, %94, %100, %106, %112, %118 in 1 : vector<32x8xf32>, vector<32x8xf32>, vector<32x8xf32>, vector<32x8xf32>, vector<32x8xf32>, vector<32x8xf32>, vector<32x8xf32>, vector<32x8xf32> -> vector<32x64xf32>
    %cst_26 = arith.constant 0.000000e+00 : f32
    %120 = vector.broadcast %cst_26 : f32 to vector<32x64xf32>
    %121 = arith.cmpf ogt, %119, %120 : vector<32x64xf32>
    %cst_27 = arith.constant 0.000000e+00 : f32
    %122 = vector.broadcast %cst_27 : f32 to vector<32x64xf32>
    %123 = arith.minimumf %119, %122 : vector<32x64xf32>
    %124 = math.exp %123 : vector<32x64xf32>
    %cst_28 = arith.constant 1.000000e+00 : f32
    %125 = vector.broadcast %cst_28 : f32 to vector<32x64xf32>
    %126 = arith.subf %124, %125 : vector<32x64xf32>
    %127 = arith.select %121, %119, %126 : vector<32x64xi1>, vector<32x64xf32>
    %c0_29 = arith.constant 0 : index
    %c0_30 = arith.constant 0 : index
    %128 = vector.load %arg8[%c0_29, %c0_30] : memref<64x128xf32, #tpu.memory_space<vmem>>, vector<64x128xf32>
    %cst_31 = arith.constant dense<0.000000e+00> : vector<32x128xf32>
    %129 = tpu.matmul %127, %128, %cst_31 {dimension_numbers = #tpu.dot_dimension_numbers<[1], [0], [0], [1], [0, 0, 1, 1], [], []>} : vector<32x64xf32>, vector<64x128xf32>, vector<32x128xf32> -> vector<32x128xf32>
    %c0_32 = arith.constant 0 : index
    %c0_33 = arith.constant 0 : index
    %130 = vector.load %arg9[%c0_32, %c0_33] : memref<1x128xf32, #tpu.memory_space<vmem>>, vector<1x128xf32>
    %131 = vector.broadcast %130 : vector<1x128xf32> to vector<32x128xf32>
    %132 = arith.addf %129, %131 : vector<32x128xf32>
    %c0_34 = arith.constant 0 : index
    %c0_35 = arith.constant 0 : index
    %133 = vector.load %arg10[%c0_34, %c0_35] : memref<128x1xf32, #tpu.memory_space<vmem>>, vector<128x1xf32>
    %cst_36 = arith.constant dense<0.000000e+00> : vector<32x1xf32>
    %134 = tpu.matmul %132, %133, %cst_36 {dimension_numbers = #tpu.dot_dimension_numbers<[1], [0], [0], [1], [0, 0, 1, 1], [], []>} : vector<32x128xf32>, vector<128x1xf32>, vector<32x1xf32> -> vector<32x1xf32>
    %c0_37 = arith.constant 0 : index
    %c0_38 = arith.constant 0 : index
    %135 = vector.load %arg11[%c0_37, %c0_38] : memref<1x128xf32, #tpu.memory_space<vmem>>, vector<1x128xf32>
    %cst_39 = arith.constant dense<0.000000e+00> : vector<1x32xf32>
    %136 = tpu.matmul %135, %132, %cst_39 {dimension_numbers = #tpu.dot_dimension_numbers<[1], [1], [0], [0], [0, 0, 1, 0], [], []>} : vector<1x128xf32>, vector<32x128xf32>, vector<1x32xf32> -> vector<1x32xf32>
    %137 = vector.broadcast %134 : vector<32x1xf32> to vector<32x32xf32>
    %138 = vector.broadcast %136 : vector<1x32xf32> to vector<32x32xf32>
    %139 = arith.addf %137, %138 : vector<32x32xf32>
    %cst_40 = arith.constant 0.00999999977 : f32
    %140 = vector.broadcast %cst_40 : f32 to vector<32x32xf32>
    %141 = arith.mulf %140, %139 : vector<32x32xf32>
    %142 = arith.maximumf %139, %141 : vector<32x32xf32>
    %143 = arith.addf %142, %1 : vector<32x32xf32>
    %cst_41 = arith.constant dense<0xFF800000> : vector<32xf32>
    %144 = vector.multi_reduction <maximumf>, %143, %cst_41 [1] : vector<32x32xf32> to vector<32xf32>
    %145 = vector.shape_cast %144 : vector<32xf32> to vector<32x1xf32>
    %146 = vector.broadcast %145 : vector<32x1xf32> to vector<32x32xf32>
    %147 = arith.subf %143, %146 : vector<32x32xf32>
    %148 = math.exp %147 : vector<32x32xf32>
    %cst_42 = arith.constant dense<0.000000e+00> : vector<32xf32>
    %149 = vector.multi_reduction <add>, %148, %cst_42 [1] : vector<32x32xf32> to vector<32xf32>
    %150 = vector.shape_cast %149 : vector<32xf32> to vector<32x1xf32>
    %151 = tpu.reciprocal %150 {approx = true} : vector<32x1xf32> -> vector<32x1xf32>
    %152 = vector.broadcast %151 : vector<32x1xf32> to vector<32x32xf32>
    %153 = arith.mulf %148, %152 : vector<32x32xf32>
    %cst_43 = arith.constant dense<0.000000e+00> : vector<32x128xf32>
    %154 = tpu.matmul %153, %132, %cst_43 {dimension_numbers = #tpu.dot_dimension_numbers<[1], [0], [0], [1], [0, 0, 1, 1], [], []>} : vector<32x32xf32>, vector<32x128xf32>, vector<32x128xf32> -> vector<32x128xf32>
    %c0_44 = arith.constant 0 : index
    %c0_45 = arith.constant 0 : index
    %155 = vector.load %arg12[%c0_44, %c0_45] : memref<32x128xf32, #tpu.memory_space<vmem>>, vector<32x128xf32>
    tpu.vector_store %arg12[%c0_44, %c0_45], %154 {strides = array<i32>} : memref<32x128xf32, #tpu.memory_space<vmem>>, vector<32x128xf32>,
    return
  }
  func.func @transform_0(%arg0: i32) -> (i32, i32) {
    %c0_i32 = arith.constant 0 : i32
    %c0_i32_0 = arith.constant 0 : i32
    %c0_i32_1 = arith.constant 0 : i32
    return %c0_i32, %c0_i32_0 : i32, i32
  }
  func.func @transform_1(%arg0: i32) -> (i32, i32) {
    %c0_i32 = arith.constant 0 : i32
    %c0_i32_0 = arith.constant 0 : i32
    %c0_i32_1 = arith.constant 0 : i32
    return %c0_i32, %c0_i32_0 : i32, i32
  }
  func.func @transform_2(%arg0: i32) -> (i32, i32) {
    %c0_i32 = arith.constant 0 : i32
    %c0_i32_0 = arith.constant 0 : i32
    %c0_i32_1 = arith.constant 0 : i32
    return %c0_i32, %c0_i32_0 : i32, i32
  }
  func.func @transform_3(%arg0: i32) -> (i32, i32) {
    %c0_i32 = arith.constant 0 : i32
    %c0_i32_0 = arith.constant 0 : i32
    %c0_i32_1 = arith.constant 0 : i32
    return %c0_i32, %c0_i32_0 : i32, i32
  }
  func.func @transform_4(%arg0: i32) -> (i32, i32) {
    %c0_i32 = arith.constant 0 : i32
    %c0_i32_0 = arith.constant 0 : i32
    %c0_i32_1 = arith.constant 0 : i32
    return %c0_i32, %c0_i32_0 : i32, i32
  }
  func.func @transform_5(%arg0: i32) -> (i32, i32) {
    %c0_i32 = arith.constant 0 : i32
    %c0_i32_0 = arith.constant 0 : i32
    %c0_i32_1 = arith.constant 0 : i32
    return %c0_i32, %c0_i32_0 : i32, i32
  }
  func.func @transform_6(%arg0: i32) -> (i32, i32) {
    %c0_i32 = arith.constant 0 : i32
    %c0_i32_0 = arith.constant 0 : i32
    %c0_i32_1 = arith.constant 0 : i32
    return %c0_i32, %c0_i32_0 : i32, i32
  }
  func.func @transform_7(%arg0: i32) -> (i32, i32) {
    %c0_i32 = arith.constant 0 : i32
    %c0_i32_0 = arith.constant 0 : i32
    %c0_i32_1 = arith.constant 0 : i32
    return %c0_i32, %c0_i32_0 : i32, i32
  }
  func.func @transform_8(%arg0: i32) -> (i32, i32) {
    %c0_i32 = arith.constant 0 : i32
    %c0_i32_0 = arith.constant 0 : i32
    %c0_i32_1 = arith.constant 0 : i32
    return %c0_i32, %c0_i32_0 : i32, i32
  }
  func.func @transform_9(%arg0: i32) -> (i32, i32) {
    %c0_i32 = arith.constant 0 : i32
    %c0_i32_0 = arith.constant 0 : i32
    %c0_i32_1 = arith.constant 0 : i32
    return %c0_i32, %c0_i32_0 : i32, i32
  }
  func.func @transform_10(%arg0: i32) -> (i32, i32) {
    %c0_i32 = arith.constant 0 : i32
    %c0_i32_0 = arith.constant 0 : i32
    %c0_i32_1 = arith.constant 0 : i32
    return %c0_i32, %c0_i32_0 : i32, i32
  }
  func.func @transform_11(%arg0: i32) -> (i32, i32) {
    %c0_i32 = arith.constant 0 : i32
    %c0_i32_0 = arith.constant 0 : i32
    %c0_i32_1 = arith.constant 0 : i32
    return %c0_i32, %c0_i32_0 : i32, i32
  }
}

</mosaic_0001>

<bundles_post_ra>
// kernel: gat_forward.1
= control target key start
LH: loop header
LB: loop body
LE: loop exit
PB: predicated region body
PF: predicated region fallthrough
CT: control target
= control target key end

     0   :  { %vm52_vm0 = vcmask 130048   ;;  %vm102_vm1 = vcmask 523264   ;;  %s1929_s27 = smov 112   ;;  %s1932_s28 = smov 96   ;;  %v1934_v36 = vmov 3   ;;  %v1935_v37 = vmov 2   ;;  %s2767_s2 = inlined_call_operand.vmem [shape: f32[16,64], index: 2, kind: input, shape index: {}]   ;;  %s2768_s0 = inlined_call_operand.vmem [shape: f32[32,16], index: 0, kind: input, shape index: {}]   ;;  %s2769_s4 = inlined_call_operand.vmem [shape: f32[64,8], index: 4, kind: input, shape index: {}]   ;;  %s2770_s3 = inlined_call_operand.vmem [shape: f32[1,64], index: 3, kind: input, shape index: {}]   ;;  %s2771_s5 = inlined_call_operand.vmem [shape: f32[8,64], index: 5, kind: input, shape index: {}]   ;;  %s2772_s6 = inlined_call_operand.vmem [shape: f32[256,8], index: 6, kind: input, shape index: {}]   ;;  %s2773_s1 = inlined_call_operand.vmem [shape: f32[32,32], index: 1, kind: input, shape index: {}]   ;;  %s2774_s8 = inlined_call_operand.vmem [shape: f32[1,128], index: 8, kind: input, shape index: {}]   ;;  %s2775_s7 = inlined_call_operand.vmem [shape: f32[64,128], index: 7, kind: input, shape index: {}]   ;;  %s2776_s9 = inlined_call_operand.vmem [shape: f32[128,1], index: 9, kind: input, shape index: {}]   ;;  %s2777_s10 = inlined_call_operand.vmem [shape: f32[1,128], index: 10, kind: input, shape index: {}]   ;;  %s2778_s11 = inlined_call_operand.vmem [shape: f32[32,128], index: 11, kind: output, shape index: {}]  }
   0x1   :  { %v47_v0 = vld [vmem:[%s2767_s2 + $0x8] sm:$0xff]  ;;  %v46_v1 = vld [vmem:[%s2767_s2] sm:$0xff]  ;;  %v101_v3 = vld [vmem:[%s2769_s4 + $0x38] sm:$0xff]  ;;  %s1931_s2 = smov 72   ;;  %s1933_s12 = smov 88   ;;  %1807 = vset.pattern.permute.xlu2 %v1934_v36  ;;  %1805 = vset.pattern.permute.xlu1 %v1935_v37  ;;  %v1936_v40 = vmov 1  }
   0x2   :  { %79 = vmatpush.msra.mxu0 %v47_v0  ;;  %v38_v2 = vld [vmem:[%s2768_s0] sm:$0xff]  ;;  %v100_v4 = vld [vmem:[%s2769_s4 + $0x30] sm:$0xff]  ;;  %123 = vmatpush.msra.mxu1 %v101_v3  ;;  %v99_v5 = vld [vmem:[%s2769_s4 + $0x28] sm:$0xff]  ;;  %s1942_s30 = smov 64   ;;  %s1943_s13 = smov 32   ;;  %vm468_vm2 = vcmask 261120  }
   0x3   :  { %v98_v6 = vld [vmem:[%s2769_s4 + $0x20] sm:$0xff]  ;;  %v97_v7 = vld [vmem:[%s2769_s4 + $0x18] sm:$0xff]  ;;  %v39_v8 = vld [vmem:[%s2768_s0 + $0x8] sm:$0xff]  ;;  %1803 = vset.pattern.permute.xlu0 %v1936_v40  ;;  %vm477_vm3 = vcmask 785408   ;;  %s1946_s19 = smov 16   ;;  %s1947_s20 = smov 48  }
   0x4   :  { %80 = vmatpush.msra.mxu0 %v46_v1  ;;  %124 = vmatpush.msra.mxu1 %v100_v4  ;;  %v96_v9 = vld [vmem:[%s2769_s4 + $0x10] sm:$0xff]  ;;  %v41_v11 = vld [vmem:[%s2768_s0 + $0x18] sm:$0xff]  ;;  %v95_v12 = vld [vmem:[%s2769_s4 + $0x8] sm:$0xff]  ;;  %s1948_s21 = smov 40   ;;  %s1949_s22 = smov 56   ;;  %vm1352_vm4 = vcmask 64512  }
   0x5   :  { %1658 = vmatmul.msk.f32.vlgmr.msra.gmra.mxu0 %vm52_vm0, %v38_v2  ;;  %v40_v10 = vld [vmem:[%s2768_s0 + $0x10] sm:$0xff]  ;;  %v94_v13 = vld [vmem:[%s2769_s4] sm:$0xff]  ;;  %s1927_s0 = smov 80   ;;  %s1928_s4 = smov 104   ;;  %v561_v26 = vld [vmem:[%s2772_s6 + $0x78] sm:$0xff]  ;;  %vm1361_vm5 = vcmask 195584  }
   0x6   :  { %125 = vmatpush.msra.mxu1 %v99_v5  ;;  %v1873_v14 = vld [vmem:[%s2770_s3] ss:$0 sm:$0xff]  ;;  %s1930_s3 = smov 120   ;;  %v560_v27 = vld [vmem:[%s2772_s6 + $0x70] sm:$0xff]  ;;  %v559_v28 = vld [vmem:[%s2772_s6 + $0x68] sm:$0xff]  ;;  %vm1370_vm6 = vcmask 326656  }
   0x7   :  { %v144_v25 = vld [vmem:[%s2771_s5] sm:$0xff]  ;;  %v557_v30 = vld [vmem:[%s2772_s6 + $0x58] sm:$0xff]  ;;  %v576_v32 = vld [vmem:[%s2772_s6 + $0xf0] sm:$0xff]  ;;  %vm1375_vm7 = vcmask 392192   ;;  %vm1380_vm8 = vcmask 457728  }
   0x8   :  { %126 = vmatpush.msra.mxu1 %v98_v6  ;;  %v558_v29 = vld [vmem:[%s2772_s6 + $0x60] sm:$0xff]  ;;  %v577_v31 = vld [vmem:[%s2772_s6 + $0xf8] sm:$0xff]  ;;  %v556_v33 = vld [vmem:[%s2772_s6 + $0x50] sm:$0xff] }
   0x9   :  { %607 = vmatpush.msrb.mxu0 %v577_v31  ;;  %v575_v34 = vld [vmem:[%s2772_s6 + $0xe8] sm:$0xff]  ;;  %v554_v38 = vld [vmem:[%s2772_s6 + $0x40] sm:$0xff]  ;;  %v553_v41 = vld [vmem:[%s2772_s6 + $0x38] sm:$0xff] }
   0xa   :  { %127 = vmatpush.msra.mxu1 %v97_v7  ;;  %v555_v35 = vld [vmem:[%s2772_s6 + $0x48] sm:$0xff]  ;;  %v574_v39 = vld [vmem:[%s2772_s6 + $0xe0] sm:$0xff]  ;;  %v573_v42 = vld [vmem:[%s2772_s6 + $0xd8] sm:$0xff] }
   0xb   :  { %608 = vmatpush.msrb.mxu0 %v576_v32  ;;  %v552_v43 = vld [vmem:[%s2772_s6 + $0x30] sm:$0xff]  ;;  %v571_v46 = vld [vmem:[%s2772_s6 + $0xc8] sm:$0xff]  ;;  %v550_v48 = vld [vmem:[%s2772_s6 + $0x20] sm:$0xff] }
   0xc   :  { %128 = vmatpush.msra.mxu1 %v96_v9  ;;  %v572_v44 = vld [vmem:[%s2772_s6 + $0xd0] sm:$0xff]  ;;  %v551_v47 = vld [vmem:[%s2772_s6 + $0x28] sm:$0xff]  ;;  %v570_v49 = vld [vmem:[%s2772_s6 + $0xc0] sm:$0xff]  ;;  %v1937_v9 = vmov 7  }
   0xd   :  { %1659 = vmatmul.msk.f32.gmra.mxu0 %vm52_vm0, %v39_v8  ;;  %v549_v50 = vld [vmem:[%s2772_s6 + $0x18] sm:$0xff]  ;;  %v548_v52 = vld [vmem:[%s2772_s6 + $0x10] sm:$0xff]  ;;  %v567_v54 = vld [vmem:[%s2772_s6 + $0xa8] sm:$0xff] }
   0xe   :  { %129 = vmatpush.msra.mxu1 %v95_v12  ;;  %609 = vmatpush.msrb.mxu0 %v575_v34  ;;  %v569_v51 = vld [vmem:[%s2772_s6 + $0xb8] sm:$0xff]  ;;  %v568_v53 = vld [vmem:[%s2772_s6 + $0xb0] sm:$0xff]  ;;  %v547_v56 = vld [vmem:[%s2772_s6 + $0x8] sm:$0xff] }
   0xf   :  { %v546_v57 = vld [vmem:[%s2772_s6] sm:$0xff]  ;;  %v565_v59 = vld [vmem:[%s2772_s6 + $0x98] sm:$0xff]  ;;  %v564_v60 = vld [vmem:[%s2772_s6 + $0x90] sm:$0xff] }
  0x10   :  { %130 = vmatpush.msra.mxu1 %v94_v13  ;;  %610 = vmatpush.msrb.mxu0 %v574_v39  ;;  %v566_v58 = vld [vmem:[%s2772_s6 + $0xa0] sm:$0xff]  ;;  %v563_v62 = vld [vmem:[%s2772_s6 + $0x88] sm:$0xff] }
  0x11   :  { %v562_v63 = vld [vmem:[%s2772_s6 + $0x80] sm:$0xff] }
  0x12   :  { %611 = vmatpush.msrb.mxu0 %v573_v42 }
  0x14   :  { %612 = vmatpush.msrb.mxu0 %v572_v44 }
  0x15   :  { %1660 = vmatmul.msk.f32.gmra.mxu0 %vm52_vm0, %v40_v10  ;;  %v1938_v10 = vmov 6  }
  0x16   :  { %613 = vmatpush.msrb.mxu0 %v571_v46 }
  0x18   :  { %614 = vmatpush.msrb.mxu0 %v570_v49 }
  0x1a   :  { %615 = vmatpush.msrb.mxu0 %v569_v51 }
  0x1c   :  { %616 = vmatpush.msrb.mxu0 %v568_v53 }
  0x1d   :  { %1661 = vmatmul.msk.f32.gmra.mxu0 %vm52_vm0, %v41_v11  ;;  %v1939_v11 = vmov 5  }
  0x1e   :  { %617 = vmatpush.msrb.mxu0 %v567_v54 }
  0x20   :  { %618 = vmatpush.msrb.mxu0 %v566_v58 }
  0x22   :  { %619 = vmatpush.msrb.mxu0 %v565_v59 }
  0x24   :  { %620 = vmatpush.msrb.mxu0 %v564_v60 }
  0x26   :  { %621 = vmatpush.msrb.mxu0 %v563_v62 }
  0x28   :  { %622 = vmatpush.msrb.mxu0 %v562_v63 }
  0x82   :  { %v82_v15 = vpop.f32.mrf.mxu0 }
  0x83   :  { %v83_v16 = vadd.f32 %v1873_v14, %v82_v15 }
  0x85   :  { %1662 = vmatmul.msk.f32.vlgmr.msra.gmra.mxu1 %vm102_vm1, %v83_v16 }
  0x8a   :  { %v85_v17 = vpop.f32.mrf.mxu0 }
  0x8b   :  { %v86_v18 = vadd.f32 %v1873_v14, %v85_v17 }
  0x8d   :  { %v2060_v19 = vpack.i.bf16 %v83_v16, %v86_v18  ;;  %1663 = vmatmul.msk.f32.gmra.mxu1 %vm102_vm1, %v86_v18 }
  0x8f   :  { %1754 = vrot.lane.b32.xlu0 %v2060_v19, %s1927_s0  ;;  %1744 = vrot.lane.b32.xlu2 %v2060_v19, %s1928_s4 }
  0x90   :  { %1739 = vrot.lane.b32.xlu1 %v2060_v19, %s1929_s27 }
  0x92   :  { %v88_v20 = vpop.f32.mrf.mxu0 }
  0x93   :  { %v89_v21 = vadd.f32 %v1873_v14, %v88_v20 }
  0x95   :  { %1664 = vmatmul.msk.f32.gmra.mxu1 %vm102_vm1, %v89_v21 }
  0x97   :  { %1749 = vrot.lane.b32.xlu2 %v2060_v19, %s1930_s3 }
  0x98   :  { %1759 = vrot.lane.b32.xlu1 %v2060_v19, %s1931_s2 }
  0x9a   :  { %v91_v22 = vpop.f32.mrf.mxu0 }
  0x9b   :  { %v92_v23 = vadd.f32 %v1873_v14, %v91_v22 }
  0x9d   :  { %1666 = vmatpush.xpose.msk.msra.mxu3 %vm102_vm1, %v92_v23  ;;  %664 = vmatpush.msra.mxu2 %v92_v23  ;;  %v1773_v24 = vpack.i.bf16 %v89_v21, %v92_v23 }
  0x9e   :  { %1665 = vmatmul.msk.f32.gmra.mxu1 %vm102_vm1, %v92_v23 }
  0x9f   :  { %665 = vmatpush.msra.mxu2 %v89_v21  ;;  %1774 = vrot.lane.b32.xlu0 %v1773_v24, %s1928_s4 }
  0xa0   :  { %1764 = vrot.lane.b32.xlu2 %v2060_v19, %s1932_s28  ;;  %1784 = vrot.lane.b32.xlu1 %v1773_v24, %s1927_s0 }
  0xa1   :  { %1667 = vmatpush.xpose.msk.msra.mxu3 %vm102_vm1, %v89_v21  ;;  %666 = vmatpush.msra.mxu2 %v86_v18 }
  0xa3   :  { %667 = vmatpush.msra.mxu2 %v83_v16 }
  0xa5   :  { %1668 = vmatpush.xpose.msk.msra.mxu3 %vm102_vm1, %v86_v18  ;;  %v1941_v18 = vmov 0  }
  0xa7   :  { %1779 = vrot.lane.b32.xlu0 %v1773_v24, %s1930_s3 }
  0xa8   :  { %1769 = vrot.lane.b32.xlu2 %v1773_v24, %s1929_s27  ;;  %1794 = vrot.lane.b32.xlu1 %v1773_v24, %s1932_s28 }
  0xa9   :  { %1669 = vmatpush.xpose.msk.msra.mxu3 %vm102_vm1, %v83_v16  ;;  %v1940_v16 = vmov 4  }
  0xac   :  { %1670 = vmatmul.msk.f32.vlgmr.msra.gmra.mxu3 %vm102_vm1, %v144_v25 }
  0xad   :  { %578 = vmatpush.msrb.mxu3 %v561_v26 }
  0xaf   :  { %1789 = vrot.lane.b32.xlu0 %v1773_v24, %s1931_s2  ;;  %579 = vmatpush.msrb.mxu3 %v560_v27 }
  0xb0   :  { %1799 = vrot.lane.b32.xlu2 %v1773_v24, %s1933_s12 }
  0xb1   :  { %580 = vmatpush.msrb.mxu3 %v559_v28 }
  0xb3   :  { %581 = vmatpush.msrb.mxu3 %v558_v29 }
  0xb5   :  { %582 = vmatpush.msrb.mxu3 %v557_v30 }
  0xb7   :  { %583 = vmatpush.msrb.mxu3 %v556_v33 }
  0xb9   :  { %584 = vmatpush.msrb.mxu3 %v555_v35 }
  0xbb   :  { %585 = vmatpush.msrb.mxu3 %v554_v38 }
  0xbd   :  { %586 = vmatpush.msrb.mxu3 %v553_v41 }
  0xbf   :  { %587 = vmatpush.msrb.mxu3 %v552_v43 }
  0xc1   :  { %588 = vmatpush.msrb.mxu3 %v551_v47 }
  0xc3   :  { %589 = vmatpush.msrb.mxu3 %v550_v48 }
  0xc5   :  { %590 = vmatpush.msrb.mxu3 %v549_v50  ;;  %v2245_v50 = vld [vmem:[%s2773_s1] sm:$0xff] }
  0xc7   :  { %591 = vmatpush.msrb.mxu3 %v548_v52 }
  0xc9   :  { %592 = vmatpush.msrb.mxu3 %v547_v56 }
  0xcb   :  { %593 = vmatpush.msrb.mxu3 %v546_v57 }
  0xe9   :  { %v2133_v45 = vpop.permute.xlu2 %1744 }
  0xea   :  { %v1746_v20 = vunpack.i.l.bf16 %v2133_v45  ;;  %v1747_v22 = vunpack.i.h.bf16 %v2133_v45 }
  0xf1   :  { %v2162_v55 = vpop.permute.xlu2 %1749 }
  0xf2   :  { %v1751_v30 = vunpack.i.l.bf16 %v2162_v55  ;;  %v1752_v33 = vunpack.i.h.bf16 %v2162_v55 }
  0xfa   :  { %v2179_v61 = vpop.permute.xlu2 %1764 }
  0xfb   :  { %v1766_v31 = vunpack.i.l.bf16 %v2179_v61  ;;  %v1767_v34 = vunpack.i.h.bf16 %v2179_v61 }
 0x101   :  { %v2187_v6 = vpop.permute.xlu0 %1754 }
 0x102   :  { %v1770_v0 = vpop.permute.xlu2 %1769  ;;  %v1740_v1 = vpop.permute.xlu1 %1739 }
 0x103   :  { %v132_v2 = vpop.f32.mrf.mxu1  ;;  %v1771_v3 = vunpack.i.l.bf16 %v1770_v0  ;;  %v1772_v4 = vunpack.i.h.bf16 %v1770_v0  ;;  %v1741_v5 = vunpack.i.l.bf16 %v1740_v1  ;;  %v1742_v7 = vunpack.i.h.bf16 %v1740_v1 }
 0x104   :  { %248 = vperm.xlu2 %1807, %v132_v2   ;;  %223 = vperm.xlu1 %1805, %v132_v2  }
 0x105   :  { %198 = vperm.xlu0 %1803, %v132_v2   ;;  %822 = vmatpush.msrb.mxu2 %v1771_v3 }
 0x107   :  { %823 = vmatpush.msrb.mxu2 %v1772_v4 }
 0x109   :  { %824 = vmatpush.msrb.mxu2 %v1741_v5 }
 0x10a   :  { %v2189_v8 = vpop.permute.xlu1 %1759  ;;  %v1800_v28 = vpop.permute.xlu2 %1799 }
 0x10b   :  { %825 = vmatpush.msrb.mxu2 %v1742_v7  ;;  %v135_v17 = vpop.f32.mrf.mxu1  ;;  %v1801_v32 = vunpack.i.l.bf16 %v1800_v28  ;;  %v1802_v35 = vunpack.i.h.bf16 %v1800_v28  ;;  %v2279_v7 = vld [vmem:[%s2773_s1 + $0x8] sm:$0xff] }
 0x10c   :  { %1808 = vset.pattern.permute.xlu2 %v1937_v9  ;;  %1806 = vset.pattern.permute.xlu1 %v1938_v10 }
 0x10d   :  { %1804 = vset.pattern.permute.xlu0 %v1939_v11  ;;  %348 = vperm.xlu2 %1808, %v132_v2  }
 0x10e   :  { %323 = vperm.xlu1 %1806, %v132_v2   ;;  %298 = vperm.xlu0 %1804, %v132_v2  }
 0x111   :  { %v1775_v12 = vpop.permute.xlu0 %1774 }
 0x112   :  { %v1776_v13 = vunpack.i.l.bf16 %v1775_v12  ;;  %v2194_v14 = vpop.permute.xlu1 %1784  ;;  %v1777_v15 = vunpack.i.h.bf16 %v1775_v12 }
 0x113   :  { %v138_v29 = vpop.f32.mrf.mxu1 }
 0x114   :  { %899 = vmatpush.msra.mxu3 %v1776_v13 }
 0x115   :  { %1810 = vset.pattern.permute.xlu2 %v1940_v16 }
 0x116   :  { %1809 = vset.pattern.permute.xlu1 %v1941_v18  ;;  %1813 = vset.pattern.permute.xlu0 %v1935_v37 }
 0x117   :  { %273 = vperm.xlu2 %1810, %v132_v2   ;;  %170 = vperm.xlu1 %1809, %v132_v2  }
 0x118   :  { %227 = vperm.xlu0 %1813, %v135_v17   ;;  %900 = vmatpush.msra.mxu3 %v1777_v15 }
 0x119   :  { %v1780_v21 = vpop.permute.xlu0 %1779 }
 0x11a   :  { %901 = vmatpush.msra.mxu3 %v1746_v20  ;;  %v1795_v23 = vpop.permute.xlu1 %1794  ;;  %v1781_v24 = vunpack.i.l.bf16 %v1780_v21  ;;  %v1782_v25 = vunpack.i.h.bf16 %v1780_v21 }
 0x11b   :  { %v1796_v26 = vunpack.i.l.bf16 %v1795_v23  ;;  %v1797_v27 = vunpack.i.h.bf16 %v1795_v23  ;;  %v141_v38 = vpop.f32.mrf.mxu1 }
 0x11c   :  { %902 = vmatpush.msra.mxu3 %v1747_v22  ;;  %745 = vmatpush.msrb.mxu1 %v1781_v24 }
 0x11d   :  { %972 = vmatpush.msra.mxu0 %v1796_v26 }
 0x11e   :  { %746 = vmatpush.msrb.mxu1 %v1782_v25 }
 0x11f   :  { %1812 = vset.pattern.permute.xlu2 %v1939_v11  ;;  %1811 = vset.pattern.permute.xlu1 %v1936_v40 }
 0x120   :  { %1820 = vset.pattern.permute.xlu0 %v1939_v11  ;;  %973 = vmatpush.msra.mxu0 %v1797_v27 }
 0x121   :  { %302 = vperm.xlu2 %1812, %v135_v17   ;;  %202 = vperm.xlu1 %1811, %v135_v17   ;;  %v2228_v42 = vpop.permute.xlu0 %1789 }
 0x122   :  { %306 = vperm.xlu0 %1820, %v138_v29   ;;  %747 = vmatpush.msrb.mxu1 %v1751_v30  ;;  %v2301_v30 = vld [vmem:[%s2773_s1 + $0x10] sm:$0xff] }
 0x123   :  { %974 = vmatpush.msra.mxu0 %v1766_v31 }
 0x124   :  { %748 = vmatpush.msrb.mxu1 %v1752_v33 }
 0x125   :  { %975 = vmatpush.msra.mxu0 %v1767_v34 }
 0x126   :  { %1049 = vmatpush.msra.mxu1 %v1801_v32 }
 0x128   :  { %1050 = vmatpush.msra.mxu1 %v1802_v35 }
 0x129   :  { %1815 = vset.pattern.permute.xlu2 %v1934_v36  ;;  %1814 = vset.pattern.permute.xlu1 %v1938_v10 }
 0x12a   :  { %1825 = vset.pattern.permute.xlu0 %v1941_v18  ;;  %252 = vperm.xlu2 %1815, %v135_v17  }
 0x12b   :  { %327 = vperm.xlu1 %1814, %v135_v17   ;;  %180 = vperm.xlu0 %1825, %v138_v29  }
 0x12f   :  { %v2232_v44 = vpop.f32.mrf.mxu3 }
 0x130   :  { %v2236_v45 = vperm.slane %v2232_v44, 2  ;;  %v2239_v46 = vperm.slane %v2232_v44, 1  ;;  %v2249_v52 = vperm.slane %v2232_v44, 7  ;;  %v2257_v57 = vperm.slane %v2232_v44, 6 }
 0x131   :  { %v2261_v58 = vperm.slane %v2232_v44, 5  ;;  %v2267_v0 = vperm.slane %v2232_v44, 3 }
 0x132   :  { %1818 = vset.pattern.permute.xlu2 %v1940_v16 }
 0x133   :  { %1816 = vset.pattern.permute.xlu1 %v1937_v9  ;;  %1827 = vset.pattern.permute.xlu0 %v1936_v40 }
 0x134   :  { %277 = vperm.xlu2 %1818, %v135_v17   ;;  %352 = vperm.xlu1 %1816, %v135_v17  }
 0x135   :  { %210 = vperm.xlu0 %1827, %v141_v38  }
 0x13c   :  { %1819 = vset.pattern.permute.xlu2 %v1936_v40  ;;  %1817 = vset.pattern.permute.xlu1 %v1941_v18 }
 0x13d   :  { %1832 = vset.pattern.permute.xlu0 %v1937_v9  ;;  %175 = vperm.xlu1 %1817, %v135_v17  }
 0x13e   :  { %206 = vperm.xlu2 %1819, %v138_v29   ;;  %360 = vperm.xlu0 %1832, %v141_v38  }
 0x145   :  { %1821 = vset.pattern.permute.xlu1 %v1935_v37 }
 0x146   :  { %1822 = vset.pattern.permute.xlu2 %v1938_v10  ;;  %1833 = vset.pattern.permute.xlu0 %v1941_v18 }
 0x147   :  { %231 = vperm.xlu1 %1821, %v138_v29   ;;  %331 = vperm.xlu2 %1822, %v138_v29  }
 0x148   :  { %185 = vperm.xlu0 %1833, %v141_v38  }
 0x14f   :  { %1823 = vset.pattern.permute.xlu1 %v1934_v36  ;;  %1824 = vset.pattern.permute.xlu2 %v1937_v9 }
 0x150   :  { %256 = vperm.xlu1 %1823, %v138_v29   ;;  %356 = vperm.xlu2 %1824, %v138_v29  }
 0x151   :  { %1841 = vset.pattern.permute.xlu0 %v1935_v37 }
 0x158   :  { %1826 = vset.pattern.permute.xlu1 %v1940_v16  ;;  %1829 = vset.pattern.permute.xlu2 %v1935_v37 }
 0x159   :  { %281 = vperm.xlu1 %1826, %v138_v29   ;;  %235 = vperm.xlu2 %1829, %v141_v38  }
 0x15e   :  { %v249_v39 = vpop.permute.xlu2 %248 }
 0x15f   :  { %v264_v4 = vadd.f32 %v2267_v0, %v249_v39 }
 0x161   :  { %1828 = vset.pattern.permute.xlu1 %v1939_v11  ;;  %1831 = vset.pattern.permute.xlu2 %v1934_v36  ;;  %v268_v15 = vadd.f32 %v264_v4, %v2245_v50 }
 0x162   :  { %260 = vperm.xlu2 %1831, %v141_v38   ;;  %310 = vperm.xlu1 %1828, %v141_v38  }
 0x167   :  { %v349_v41 = vpop.permute.xlu2 %348 }
 0x168   :  { %v364_v56 = vadd.f32 %v2249_v52, %v349_v41 }
 0x16a   :  { %1830 = vset.pattern.permute.xlu1 %v1938_v10  ;;  %v368_v61 = vadd.f32 %v364_v56, %v2245_v50 }
 0x16b   :  { %335 = vperm.xlu1 %1830, %v141_v38  }
 0x171   :  { %v2230_v43 = vpop.permute.xlu2 %273 }
 0x173   :  { %1834 = vset.pattern.permute.xlu1 %v1940_v16 }
 0x174   :  { %285 = vperm.xlu1 %1834, %v141_v38  }
 0x176   :  { %v224_v47 = vpop.permute.xlu1 %223 }
 0x177   :  { %v239_v48 = vadd.f32 %v2236_v45, %v224_v47  ;;  %v199_v49 = vpop.permute.xlu0 %198 }
 0x178   :  { %v214_v51 = vadd.f32 %v2239_v46, %v199_v49 }
 0x179   :  { %v243_v53 = vadd.f32 %v239_v48, %v2245_v50 }
 0x17a   :  { %v218_v54 = vadd.f32 %v214_v51, %v2245_v50 }
 0x17b   :  { %v303_v55 = vpop.permute.xlu2 %302  ;;  %392 = vrot.lane.b32.xlu0 %v243_v53, %s1942_s30 }
 0x17c   :  { %376 = vrot.lane.b32.xlu1 %v218_v54, %s1943_s13  ;;  %v315_v5 = vadd.f32 %v2261_v58, %v303_v55 }
 0x17d   :  { %1840 = vset.pattern.permute.xlu1 %v1936_v40 }
 0x17e   :  { %v319_v17 = vadd.f32 %v315_v5, %v2279_v7 }
 0x180   :  { %v324_v59 = vpop.permute.xlu1 %323  ;;  %v299_v60 = vpop.permute.xlu0 %298 }
 0x181   :  { %v339_v62 = vadd.f32 %v2257_v57, %v324_v59  ;;  %v314_v63 = vadd.f32 %v2261_v58, %v299_v60  ;;  %v2323_v60 = vperm.slane %v2232_v44, 0 }
 0x183   :  { %v343_v1 = vadd.f32 %v339_v62, %v2245_v50  ;;  %v318_v2 = vadd.f32 %v314_v63, %v2245_v50  ;;  %456 = vrot.lane.b32.xlu0 %v368_v61, %s1932_s28 }
 0x184   :  { %v253_v3 = vpop.permute.xlu2 %252 }
 0x185   :  { %424 = vrot.lane.b32.xlu2 %v318_v2, %s1943_s13  ;;  %440 = vrot.lane.b32.xlu1 %v343_v1, %s1942_s30  ;;  %v265_v22 = vadd.f32 %v2267_v0, %v253_v3 }
 0x187   :  { %v269_v24 = vadd.f32 %v265_v22, %v2279_v7 }
 0x189   :  { %v2281_v12 = vpop.permute.xlu1 %170 }
 0x18a   :  { %v228_v13 = vpop.permute.xlu0 %227 }
 0x18b   :  { %v240_v20 = vadd.f32 %v2236_v45, %v228_v13 }
 0x18d   :  { %408 = vrot.lane.b32.xlu2 %v268_v15, %s1932_s28  ;;  %426 = vrot.lane.b32.xlu1 %v319_v17, %s1943_s13  ;;  %v244_v23 = vadd.f32 %v240_v20, %v2279_v7 }
 0x18e   :  { %v2288_v21 = vpop.permute.xlu2 %277 }
 0x193   :  { %v203_v25 = vpop.permute.xlu1 %202 }
 0x194   :  { %v215_v26 = vadd.f32 %v2239_v46, %v203_v25  ;;  %v307_v27 = vpop.permute.xlu0 %306 }
 0x195   :  { %410 = vrot.lane.b32.xlu1 %v269_v24, %s1932_s28  ;;  %394 = vrot.lane.b32.xlu2 %v244_v23, %s1942_s30  ;;  %v316_v29 = vadd.f32 %v2261_v58, %v307_v27  ;;  %v2341_v23 = vld [vmem:[%s2773_s1 + $0x18] sm:$0xff] }
 0x196   :  { %v219_v28 = vadd.f32 %v215_v26, %v2279_v7 }
 0x197   :  { %v320_v32 = vadd.f32 %v316_v29, %v2301_v30 }
 0x198   :  { %v207_v31 = vpop.permute.xlu2 %206  ;;  %378 = vrot.lane.b32.xlu0 %v219_v28, %s1943_s13 }
 0x199   :  { %v216_v54 = vadd.f32 %v2239_v46, %v207_v31 }
 0x19b   :  { %v220_v59 = vadd.f32 %v216_v54, %v2301_v30 }
 0x19d   :  { %v328_v33 = vpop.permute.xlu1 %327  ;;  %v2305_v34 = vpop.permute.xlu0 %180  ;;  %428 = vrot.lane.b32.xlu1 %v320_v32, %s1943_s13 }
 0x19e   :  { %v340_v35 = vadd.f32 %v2257_v57, %v328_v33 }
 0x1a0   :  { %v344_v38 = vadd.f32 %v340_v35, %v2279_v7 }
 0x1a1   :  { %v332_v39 = vpop.permute.xlu2 %331 }
 0x1a2   :  { %442 = vrot.lane.b32.xlu0 %v344_v38, %s1942_s30  ;;  %v341_v41 = vadd.f32 %v2257_v57, %v332_v39 }
 0x1a4   :  { %v345_v51 = vadd.f32 %v341_v41, %v2301_v30 }
 0x1a6   :  { %v353_v47 = vpop.permute.xlu1 %352 }
 0x1a7   :  { %v365_v48 = vadd.f32 %v2249_v52, %v353_v47  ;;  %v211_v49 = vpop.permute.xlu0 %210  ;;  %v2365_v47 = vperm.slane %v2232_v44, 4 }
 0x1a8   :  { %v217_v22 = vadd.f32 %v2239_v46, %v211_v49 }
 0x1a9   :  { %v369_v53 = vadd.f32 %v365_v48, %v2279_v7 }
 0x1aa   :  { %444 = vrot.lane.b32.xlu0 %v345_v51, %s1942_s30  ;;  %v357_v2 = vpop.permute.xlu2 %356  ;;  %v221_v26 = vadd.f32 %v217_v22, %v2341_v23 }
 0x1ab   :  { %458 = vrot.lane.b32.xlu2 %v369_v53, %s1932_s28  ;;  %v366_v4 = vadd.f32 %v2249_v52, %v357_v2 }
 0x1ad   :  { %v370_v15 = vadd.f32 %v366_v4, %v2301_v30 }
 0x1af   :  { %v2318_v55 = vpop.permute.xlu1 %175 }
 0x1b0   :  { %v361_v56 = vpop.permute.xlu0 %360 }
 0x1b1   :  { %v367_v28 = vadd.f32 %v2249_v52, %v361_v56 }
 0x1b3   :  { %380 = vrot.lane.b32.xlu2 %v220_v59, %s1943_s13  ;;  %v236_v20 = vpop.permute.xlu2 %235  ;;  %v371_v29 = vadd.f32 %v367_v28, %v2341_v23 }
 0x1b4   :  { %v242_v24 = vadd.f32 %v2236_v45, %v236_v20 }
 0x1b6   :  { %v246_v27 = vadd.f32 %v242_v24, %v2341_v23 }
 0x1b9   :  { %v232_v61 = vpop.permute.xlu1 %231 }
 0x1ba   :  { %v241_v62 = vadd.f32 %v2236_v45, %v232_v61  ;;  %v186_v63 = vpop.permute.xlu0 %185 }
 0x1bb   :  { %v2327_v1 = vadd.f32 %v2323_v60, %v186_v63 }
 0x1bc   :  { %v245_v3 = vadd.f32 %v241_v62, %v2301_v30  ;;  %v261_v45 = vpop.permute.xlu2 %260 }
 0x1bd   :  { %v267_v33 = vadd.f32 %v2267_v0, %v261_v45 }
 0x1be   :  { %396 = vrot.lane.b32.xlu2 %v245_v3, %s1942_s30 }
 0x1bf   :  { %v271_v39 = vadd.f32 %v267_v33, %v2341_v23 }
 0x1c2   :  { %v257_v5 = vpop.permute.xlu1 %256 }
 0x1c3   :  { %v266_v13 = vadd.f32 %v2267_v0, %v257_v5  ;;  %v289_v0 = vadd.f32 %v2365_v47, %v2230_v43 }
 0x1c5   :  { %v270_v17 = vadd.f32 %v266_v13, %v2301_v30  ;;  %v293_v51 = vadd.f32 %v289_v0, %v2245_v50 }
 0x1c6   :  { %460 = vrot.lane.b32.xlu2 %v370_v15, %s1932_s28 }
 0x1c7   :  { %412 = vrot.lane.b32.xlu1 %v270_v17, %s1932_s28 }
 0x1cb   :  { %v2344_v25 = vpop.permute.xlu1 %281 }
 0x1ce   :  { %382 = vrot.lane.b32.xlu2 %v221_v26, %s1943_s13  ;;  %v290_v26 = vadd.f32 %v2365_v47, %v2288_v21 }
 0x1cf   :  { %398 = vrot.lane.b32.xlu1 %v246_v27, %s1942_s30 }
 0x1d4   :  { %v311_v46 = vpop.permute.xlu1 %310 }
 0x1d5   :  { %v317_v31 = vadd.f32 %v2261_v58, %v311_v46 }
 0x1d7   :  { %v321_v32 = vadd.f32 %v317_v31, %v2341_v23  ;;  %462 = vrot.lane.b32.xlu1 %v371_v29, %s1932_s28 }
 0x1d9   :  { %430 = vrot.lane.b32.xlu0 %v321_v32, %s1943_s13 }
 0x1dd   :  { %v336_v35 = vpop.permute.xlu1 %335 }
 0x1de   :  { %v342_v38 = vadd.f32 %v2257_v57, %v336_v35  ;;  %v189_v57 = vadd.f32 %v2323_v60, %v2281_v12 }
 0x1df   :  { %v425_v49 = vpop.permute.xlu2 %424 }
 0x1e0   :  { %v346_v52 = vadd.f32 %v342_v38, %v2341_v23  ;;  %v193_v53 = vadd.f32 %v189_v57, %v2245_v50  ;;  %v482_v56 = vsel %vm468_vm2, %v293_v51, %v425_v49  ;;  %v190_v50 = vadd.f32 %v2323_v60, %v2318_v55 }
 0x1e1   :  { %414 = vrot.lane.b32.xlu0 %v271_v39, %s1932_s28  ;;  %v294_v55 = vadd.f32 %v290_v26, %v2279_v7  ;;  %v191_v57 = vadd.f32 %v2323_v60, %v2305_v34  ;;  %v196_v26 = vadd.f32 %v2327_v1, %v2341_v23 }
 0x1e2   :  { %446 = vrot.lane.b32.xlu2 %v346_v52, %s1942_s30  ;;  %v194_v17 = vadd.f32 %v190_v50, %v2279_v7 }
 0x1e6   :  { %v2362_v58 = vpop.permute.xlu1 %285 }
 0x1e7   :  { %v409_v12 = vpop.permute.xlu2 %408  ;;  %v292_v50 = vadd.f32 %v2365_v47, %v2362_v58 }
 0x1ed   :  { %v393_v48 = vpop.permute.xlu0 %392 }
 0x1ee   :  { %v377_v41 = vpop.permute.xlu1 %376 }
 0x1ef   :  { %v469_v59 = vsel %vm468_vm2, %v193_v53, %v377_v41  ;;  %v395_v24 = vpop.permute.xlu2 %394 }
 0x1f0   :  { %v473_v61 = vsel %vm102_vm1, %v469_v59, %v393_v48  ;;  %v291_v48 = vadd.f32 %v2365_v47, %v2344_v25  ;;  %v195_v59 = vadd.f32 %v191_v57, %v2301_v30  ;;  %v1761_v57 = vunpack.i.l.bf16 %v2189_v8 }
 0x1f1   :  { %v478_v63 = vsel %vm477_vm3, %v473_v61, %v409_v12 }
 0x1f2   :  { %v494_v3 = vmul.f32 0.01, %v478_v63  ;;  %v295_v49 = vadd.f32 %v291_v48, %v2301_v30  ;;  %v1791_v48 = vunpack.i.l.bf16 %v2228_v42 }
 0x1f4   :  { %v2383_v13 = vmax.f32 %v478_v63, %v494_v3 }
 0x1f5   :  { %v457_v43 = vpop.permute.xlu0 %456 }
 0x1f7   :  { %v441_v54 = vpop.permute.xlu1 %440 }
 0x1f8   :  { %v486_v44 = vsel %vm102_vm1, %v482_v56, %v441_v54 }
 0x1f9   :  { %v490_v62 = vsel %vm477_vm3, %v486_v44, %v457_v43 }
 0x1fa   :  { %v495_v2 = vmul.f32 0.01, %v490_v62 }
 0x1fc   :  { %v2379_v4 = vmax.f32 %v490_v62, %v495_v2 }
 0x1fe   :  { %v510_v15 = vmax.f32 %v2383_v13, %v2379_v4 }
 0x1ff   :  { %v427_v5 = vpop.permute.xlu1 %426 }
 0x200   :  { %v483_v29 = vsel %vm468_vm2, %v294_v55, %v427_v5  ;;  %v296_v5 = vadd.f32 %v292_v50, %v2341_v23 }
 0x205   :  { %v459_v32 = vpop.permute.xlu2 %458 }
 0x207   :  { %v411_v28 = vpop.permute.xlu1 %410 }
 0x20a   :  { %v379_v20 = vpop.permute.xlu0 %378 }
 0x20b   :  { %511 = vmax.xlane.f32.xlu2 %v510_v15  ;;  %v470_v22 = vsel %vm468_vm2, %v194_v17, %v379_v20 }
 0x20c   :  { %v474_v27 = vsel %vm102_vm1, %v470_v22, %v395_v24 }
 0x20d   :  { %v479_v46 = vsel %vm477_vm3, %v474_v27, %v411_v28  ;;  %v381_v7 = vpop.permute.xlu2 %380 }
 0x20e   :  { %v496_v33 = vmul.f32 0.01, %v479_v46  ;;  %v471_v61 = vsel %vm468_vm2, %v195_v59, %v381_v7  ;;  %v1786_v7 = vunpack.i.l.bf16 %v2194_v14 }
 0x20f   :  { %v429_v0 = vpop.permute.xlu1 %428 }
 0x210   :  { %v2397_v39 = vmax.f32 %v479_v46, %v496_v33  ;;  %v484_v54 = vsel %vm468_vm2, %v295_v49, %v429_v0  ;;  %v1787_v0 = vunpack.i.h.bf16 %v2194_v14  ;;  %v1757_v49 = vunpack.i.h.bf16 %v2187_v6 }
 0x211   :  { %v1762_v14 = vunpack.i.h.bf16 %v2189_v8 }
 0x214   :  { %v443_v31 = vpop.permute.xlu0 %442 }
 0x215   :  { %v487_v45 = vsel %vm102_vm1, %v483_v29, %v443_v31 }
 0x216   :  { %v491_v35 = vsel %vm477_vm3, %v487_v45, %v459_v32 }
 0x217   :  { %v497_v38 = vmul.f32 0.01, %v491_v35 }
 0x218   :  { %v397_v41 = vpop.permute.xlu2 %396 }
 0x219   :  { %v2399_v21 = vmax.f32 %v491_v35, %v497_v38  ;;  %v475_v25 = vsel %vm102_vm1, %v471_v61, %v397_v41 }
 0x21b   :  { %v513_v52 = vmax.f32 %v2397_v39, %v2399_v21 }
 0x21c   :  { %v445_v51 = vpop.permute.xlu0 %444 }
 0x21d   :  { %514 = vmax.xlane.f32.xlu0 %v513_v52  ;;  %v488_v56 = vsel %vm102_vm1, %v484_v54, %v445_v51 }
 0x220   :  { %v461_v53 = vpop.permute.xlu2 %460 }
 0x221   :  { %v492_v44 = vsel %vm477_vm3, %v488_v56, %v461_v53 }
 0x222   :  { %v499_v43 = vmul.f32 0.01, %v492_v44 }
 0x224   :  { %v2415_v12 = vmax.f32 %v492_v44, %v499_v43 }
 0x228   :  { %v383_v30 = vpop.permute.xlu2 %382 }
 0x229   :  { %v472_v28 = vsel %vm468_vm2, %v196_v26, %v383_v30 }
 0x239   :  { %v413_v62 = vpop.permute.xlu1 %412 }
 0x23a   :  { %v480_v34 = vsel %vm477_vm3, %v475_v25, %v413_v62 }
 0x23b   :  { %v498_v60 = vmul.f32 0.01, %v480_v34 }
 0x23c   :  { %v447_v17 = vpop.permute.xlu2 %446 }
 0x23d   :  { %v2417_v63 = vmax.f32 %v480_v34, %v498_v60 }
 0x23f   :  { %v516_v2 = vmax.f32 %v2417_v63, %v2415_v12 }
 0x241   :  { %517 = vmax.xlane.f32.xlu1 %v516_v2  ;;  %v399_v3 = vpop.permute.xlu1 %398 }
 0x242   :  { %v476_v55 = vsel %vm102_vm1, %v472_v28, %v399_v3 }
 0x249   :  { %v463_v24 = vpop.permute.xlu1 %462 }
 0x24b   :  { %v431_v15 = vpop.permute.xlu0 %430 }
 0x24c   :  { %v485_v20 = vsel %vm468_vm2, %v296_v5, %v431_v15 }
 0x24d   :  { %v489_v22 = vsel %vm102_vm1, %v485_v20, %v447_v17 }
 0x24e   :  { %v493_v27 = vsel %vm477_vm3, %v489_v22, %v463_v24 }
 0x24f   :  { %v501_v58 = vmul.f32 0.01, %v493_v27 }
 0x251   :  { %v2434_v32 = vmax.f32 %v493_v27, %v501_v58 }
 0x253   :  { %v415_v46 = vpop.permute.xlu0 %414 }
 0x254   :  { %v481_v47 = vsel %vm477_vm3, %v476_v55, %v415_v46 }
 0x255   :  { %v500_v29 = vmul.f32 0.01, %v481_v47 }
 0x257   :  { %v2432_v31 = vmax.f32 %v481_v47, %v500_v29 }
 0x259   :  { %v519_v45 = vmax.f32 %v2432_v31, %v2434_v32 }
 0x25b   :  { %520 = vmax.xlane.f32.xlu2 %v519_v45 }
 0x27e   :  { %v512_v1 = vpop.xlane.xlu2 %511 }
 0x27f   :  { %v522_v23 = vsub.f32 %v2383_v13, %v512_v1  ;;  %v523_v33 = vsub.f32 %v2379_v4, %v512_v1  ;;  %v1792_v4 = vunpack.i.h.bf16 %v2228_v42  ;;  %v1756_v13 = vunpack.i.l.bf16 %v2187_v6 }
 0x281   :  { %v530_v35 = vmul.f32 1.442695, %v522_v23  ;;  %v532_v38 = vmul.f32 1.442695, %v523_v33 }
 0x283   :  { %1875 = vpow2.f32 %v530_v35 }
 0x284   :  { %1877 = vpow2.f32 %v532_v38 }
 0x289   :  { %v1876_v52 = vpop.eup %1875 }
 0x28a   :  { %v2441_v41 = vpop.eup %1877  ;;  %594 = vmatmul.f32.vlgmr.msrb.gmra.mxu3 %v1876_v52  ;;  %1671 = vmatmul.msk.f32.vlgmr.msra.gmra.mxu2 %vm468_vm2, %v1876_v52 }
 0x28b   :  { %623 = vmatmul.f32.vlgmr.msrb.gmra.mxu0 %v2441_v41  ;;  %1126 = vmatpush.msra.mxu2 %v1786_v7 }
 0x28c   :  { %1203 = vmatpush.msrb.mxu3 %v1791_v48  ;;  %859 = vrot.lane.b32.xlu0 %v1876_v52, %s1943_s13 }
 0x28d   :  { %782 = vrot.lane.b32.xlu1 %v1876_v52, %s1942_s30  ;;  %1127 = vmatpush.msra.mxu2 %v1787_v0 }
 0x28e   :  { %1204 = vmatpush.msrb.mxu3 %v1792_v4 }
 0x28f   :  { %1128 = vmatpush.msra.mxu2 %v1756_v13 }
 0x290   :  { %1205 = vmatpush.msrb.mxu3 %v1761_v57  ;;  %v515_v51 = vpop.xlane.xlu0 %514 }
 0x291   :  { %1129 = vmatpush.msra.mxu2 %v1757_v49  ;;  %v524_v42 = vsub.f32 %v2397_v39, %v515_v51  ;;  %v525_v53 = vsub.f32 %v2399_v21, %v515_v51 }
 0x292   :  { %1206 = vmatpush.msrb.mxu3 %v1762_v14 }
 0x293   :  { %v534_v54 = vmul.f32 1.442695, %v524_v42  ;;  %v536_v56 = vmul.f32 1.442695, %v525_v53 }
 0x294   :  { %1086 = vrot.lane.b32.xlu0 %v2441_v41, %s1942_s30 }
 0x295   :  { %1879 = vpow2.f32 %v534_v54  ;;  %705 = vrot.lane.b32.xlu1 %v1876_v52, %s1932_s28 }
 0x296   :  { %1881 = vpow2.f32 %v536_v56 }
 0x29b   :  { %v1880_v6 = vpop.eup %1879 }
 0x29c   :  { %v1882_v59 = vpop.eup %1881  ;;  %861 = vrot.lane.b32.xlu2 %v1880_v6, %s1943_s13  ;;  %784 = vrot.lane.b32.xlu0 %v1880_v6, %s1942_s30 }
 0x29d   :  { %626 = vmatmul.f32.gmra.mxu0 %v1882_v59  ;;  %707 = vrot.lane.b32.xlu1 %v1880_v6, %s1932_s28 }
 0x29e   :  { %597 = vmatmul.f32.gmra.mxu3 %v1880_v6  ;;  %1672 = vmatmul.msk.f32.gmra.mxu2 %vm468_vm2, %v1880_v6 }
 0x2b4   :  { %v518_v8 = vpop.xlane.xlu1 %517 }
 0x2b5   :  { %v526_v39 = vsub.f32 %v2417_v63, %v518_v8  ;;  %v527_v21 = vsub.f32 %v2415_v12, %v518_v8 }
 0x2b7   :  { %v538_v44 = vmul.f32 1.442695, %v526_v39  ;;  %v540_v61 = vmul.f32 1.442695, %v527_v21 }
 0x2b9   :  { %1883 = vpow2.f32 %v538_v44 }
 0x2ba   :  { %1885 = vpow2.f32 %v540_v61 }
 0x2bf   :  { %v1884_v25 = vpop.eup %1883 }
 0x2c0   :  { %v1886_v43 = vpop.eup %1885  ;;  %709 = vrot.lane.b32.xlu1 %v1884_v25, %s1932_s28  ;;  %863 = vrot.lane.b32.xlu2 %v1884_v25, %s1943_s13 }
 0x2c1   :  { %629 = vmatmul.f32.gmra.mxu0 %v1886_v43  ;;  %786 = vrot.lane.b32.xlu0 %v1884_v25, %s1942_s30 }
 0x2c2   :  { %600 = vmatmul.f32.gmra.mxu3 %v1884_v25  ;;  %1673 = vmatmul.msk.f32.gmra.mxu2 %vm468_vm2, %v1884_v25 }
 0x2c8   :  { %1163 = vrot.lane.b32.xlu1 %v2441_v41, %s1943_s13  ;;  %1009 = vrot.lane.b32.xlu2 %v2441_v41, %s1932_s28 }
 0x2ce   :  { %v521_v62 = vpop.xlane.xlu2 %520 }
 0x2cf   :  { %v528_v34 = vsub.f32 %v2432_v31, %v521_v62  ;;  %v529_v60 = vsub.f32 %v2434_v32, %v521_v62 }
 0x2d0   :  { %1088 = vrot.lane.b32.xlu1 %v1882_v59, %s1942_s30 }
 0x2d1   :  { %v542_v12 = vmul.f32 1.442695, %v528_v34  ;;  %v544_v63 = vmul.f32 1.442695, %v529_v60 }
 0x2d3   :  { %1887 = vpow2.f32 %v542_v12 }
 0x2d4   :  { %1889 = vpow2.f32 %v544_v63 }
 0x2d8   :  { %1090 = vrot.lane.b32.xlu1 %v1886_v43, %s1942_s30 }
 0x2d9   :  { %v1888_v2 = vpop.eup %1887 }
 0x2da   :  { %v1890_v30 = vpop.eup %1889  ;;  %865 = vrot.lane.b32.xlu2 %v1888_v2, %s1943_s13  ;;  %788 = vrot.lane.b32.xlu0 %v1888_v2, %s1942_s30 }
 0x2db   :  { %632 = vmatmul.f32.gmra.mxu0 %v1890_v30  ;;  %603 = vmatmul.f32.gmra.mxu3 %v1888_v2 }
 0x2dc   :  { %1674 = vmatmul.msk.f32.gmra.mxu2 %vm468_vm2, %v1888_v2 }
 0x2e0   :  { %1092 = vrot.lane.b32.xlu1 %v1890_v30, %s1942_s30 }
 0x2e2   :  { %711 = vrot.lane.b32.xlu2 %v1888_v2, %s1932_s28  ;;  %1836 = vrot.lane.b32.xlu0 %v2060_v19, %s1933_s12  ;;  %s1945_s12 = smov 8  }
 0x2e3   :  { %1687 = vmatmul.msk.f32.vlgmr.msra.gmra.mxu0 %vm468_vm2, %v2441_v41 }
 0x2ea   :  { %1011 = vrot.lane.b32.xlu2 %v1882_v59, %s1932_s28  ;;  %1165 = vrot.lane.b32.xlu0 %v1882_v59, %s1943_s13 }
 0x2eb   :  { %1688 = vmatmul.msk.f32.gmra.mxu0 %vm468_vm2, %v1882_v59 }
 0x2f2   :  { %1013 = vrot.lane.b32.xlu2 %v1886_v43, %s1932_s28  ;;  %1167 = vrot.lane.b32.xlu0 %v1886_v43, %s1943_s13 }
 0x2f3   :  { %1689 = vmatmul.msk.f32.gmra.mxu0 %vm468_vm2, %v1886_v43 }
 0x2f6   :  { %v862_v50 = vpop.permute.xlu2 %861 }
 0x2fa   :  { %1015 = vrot.lane.b32.xlu2 %v1890_v30, %s1932_s28  ;;  %1169 = vrot.lane.b32.xlu0 %v1890_v30, %s1943_s13  ;;  %s1944_s28 = smov 24  }
 0x2fb   :  { %1690 = vmatmul.msk.f32.gmra.mxu0 %vm468_vm2, %v1890_v30 }
 0x2fe   :  { %v860_v19 = vpop.permute.xlu0 %859 }
 0x2ff   :  { %v783_v3 = vpop.permute.xlu1 %782  ;;  %1683 = vmatmul.msk.f32.vlgmr.msra.gmra.mxu3 %vm468_vm2, %v860_v19 }
 0x300   :  { %1679 = vmatmul.msk.f32.vlgmr.msrb.gmra.mxu2 %vm468_vm2, %v783_v3 }
 0x306   :  { %v2497_v5 = vpop.permute.xlu0 %1086 }
 0x307   :  { %v706_v15 = vpop.permute.xlu1 %705  ;;  %1684 = vmatmul.msk.f32.gmra.mxu3 %vm468_vm2, %v862_v50 }
 0x308   :  { %1675 = vmatmul.msk.f32.vlgmr.msrb.gmra.mxu1 %vm468_vm2, %v706_v15  ;;  %v624_v17 = vpop.f32.mrf.mxu0 }
 0x30d   :  { %v595_v20 = vpop.f32.mrf.mxu3 }
 0x30e   :  { %v625_v22 = vadd.f32 %v624_v17, %v595_v20  ;;  %v785_v24 = vpop.permute.xlu0 %784 }
 0x30f   :  { %v708_v26 = vpop.permute.xlu1 %707  ;;  %1680 = vmatmul.msk.f32.gmra.mxu2 %vm468_vm2, %v785_v24 }
 0x310   :  { %1891 = vrcp.f32 %v625_v22  ;;  %1676 = vmatmul.msk.f32.gmra.mxu1 %vm468_vm2, %v708_v26 }
 0x316   :  { %v1892_v27 = vpop.eup %1891 }
 0x317   :  { %763 = vperm.xlu1 %1840, %v1892_v27   ;;  %917 = vperm.xlu2 %1831, %v1892_v27  }
 0x318   :  { %840 = vperm.xlu0 %1841, %v1892_v27  }
 0x31a   :  { %v864_v28 = vpop.permute.xlu2 %863  ;;  %v627_v55 = vpop.f32.mrf.mxu0 }
 0x31b   :  { %1685 = vmatmul.msk.f32.gmra.mxu3 %vm468_vm2, %v864_v28 }
 0x31f   :  { %1842 = vset.pattern.permute.xlu1 %v1940_v16  ;;  %1843 = vset.pattern.permute.xlu2 %v1939_v11 }
 0x320   :  { %1845 = vset.pattern.permute.xlu0 %v1937_v9  ;;  %990 = vperm.xlu1 %1842, %v1892_v27  }
 0x321   :  { %1067 = vperm.xlu2 %1843, %v1892_v27   ;;  %1221 = vperm.xlu0 %1845, %v1892_v27   ;;  %v598_v46 = vpop.f32.mrf.mxu3 }
 0x322   :  { %v628_v58 = vadd.f32 %v627_v55, %v598_v46  ;;  %v1010_v29 = vpop.permute.xlu2 %1009 }
 0x324   :  { %1893 = vrcp.f32 %v628_v58 }
 0x328   :  { %1844 = vset.pattern.permute.xlu1 %v1938_v10 }
 0x329   :  { %1144 = vperm.xlu1 %1844, %v1892_v27   ;;  %1847 = vset.pattern.permute.xlu2 %v1936_v40 }
 0x32a   :  { %v1894_v47 = vpop.eup %1893  ;;  %1851 = vset.pattern.permute.xlu0 %v1939_v11 }
 0x32b   :  { %1071 = vperm.xlu0 %1851, %v1894_v47   ;;  %767 = vperm.xlu2 %1847, %v1894_v47  }
 0x331   :  { %1846 = vset.pattern.permute.xlu1 %v1941_v18 }
 0x332   :  { %683 = vperm.xlu1 %1846, %v1892_v27   ;;  %v710_v31 = vpop.permute.xlu1 %709 }
 0x333   :  { %1849 = vset.pattern.permute.xlu2 %v1934_v36  ;;  %v787_v32 = vpop.permute.xlu0 %786  ;;  %1677 = vmatmul.msk.f32.gmra.mxu1 %vm468_vm2, %v710_v31 }
 0x334   :  { %921 = vperm.xlu2 %1849, %v1894_v47   ;;  %1681 = vmatmul.msk.f32.gmra.mxu2 %vm468_vm2, %v787_v32  ;;  %v866_v45 = vpop.permute.xlu2 %865 }
 0x335   :  { %1686 = vmatmul.msk.f32.gmra.mxu3 %vm468_vm2, %v866_v45  ;;  %1857 = vset.pattern.permute.xlu0 %v1934_v36 }
 0x33a   :  { %1848 = vset.pattern.permute.xlu1 %v1935_v37  ;;  %v1164_v23 = vpop.permute.xlu1 %1163 }
 0x33b   :  { %844 = vperm.xlu1 %1848, %v1894_v47  }
 0x33c   :  { %1852 = vset.pattern.permute.xlu2 %v1938_v10  ;;  %v712_v1 = vpop.permute.xlu2 %711 }
 0x33d   :  { %1148 = vperm.xlu2 %1852, %v1894_v47   ;;  %1678 = vmatmul.msk.f32.gmra.mxu1 %vm468_vm2, %v712_v1 }
 0x33e   :  { %1699 = vmatmul.msk.f32.vlgmr.msrb.gmra.mxu3 %vm468_vm2, %v1164_v23  ;;  %v630_v33 = vpop.f32.mrf.mxu0 }
 0x342   :  { %v1089_v0 = vpop.permute.xlu1 %1088 }
 0x343   :  { %1850 = vset.pattern.permute.xlu1 %v1940_v16 }
 0x344   :  { %994 = vperm.xlu1 %1850, %v1894_v47   ;;  %v1012_v4 = vpop.permute.xlu2 %1011 }
 0x345   :  { %v601_v35 = vpop.f32.mrf.mxu3  ;;  %1854 = vset.pattern.permute.xlu2 %v1941_v18 }
 0x346   :  { %v631_v38 = vadd.f32 %v630_v33, %v601_v35  ;;  %688 = vperm.xlu2 %1854, %v1894_v47  }
 0x348   :  { %1895 = vrcp.f32 %v631_v38 }
 0x34a   :  { %v1091_v42 = vpop.permute.xlu1 %1090 }
 0x34c   :  { %1853 = vset.pattern.permute.xlu1 %v1937_v9  ;;  %v789_v52 = vpop.permute.xlu0 %788  ;;  %v1014_v53 = vpop.permute.xlu2 %1013 }
 0x34d   :  { %1225 = vperm.xlu1 %1853, %v1894_v47   ;;  %1682 = vmatmul.msk.f32.gmra.mxu2 %vm468_vm2, %v789_v52 }
 0x34e   :  { %v1896_v7 = vpop.eup %1895  ;;  %1855 = vset.pattern.permute.xlu2 %v1936_v40 }
 0x34f   :  { %925 = vperm.xlu0 %1857, %v1896_v7   ;;  %771 = vperm.xlu2 %1855, %v1896_v7  }
 0x352   :  { %v1093_v6 = vpop.permute.xlu1 %1092 }
 0x354   :  { %v1837_v41 = vpop.permute.xlu0 %1836  ;;  %v1016_v59 = vpop.permute.xlu2 %1015 }
 0x355   :  { %v1838_v48 = vunpack.i.l.bf16 %v1837_v41  ;;  %1856 = vset.pattern.permute.xlu1 %v1935_v37  ;;  %1695 = vmatmul.msk.f32.vlgmr.msra.gmra.mxu2 %vm468_vm2, %v2497_v5  ;;  %v1839_v13 = vunpack.i.h.bf16 %v1837_v41 }
 0x356   :  { %848 = vperm.xlu1 %1856, %v1896_v7  }
 0x357   :  { %1862 = vset.pattern.permute.xlu0 %v1941_v18  ;;  %1858 = vset.pattern.permute.xlu2 %v1940_v16 }
 0x358   :  { %693 = vperm.xlu0 %1862, %v1896_v7   ;;  %998 = vperm.xlu2 %1858, %v1896_v7   ;;  %v633_v49 = vpop.f32.mrf.mxu0 }
 0x359   :  { %1051 = vmatpush.msra.mxu1 %v1838_v48 }
 0x35b   :  { %1052 = vmatpush.msra.mxu1 %v1839_v13 }
 0x35c   :  { %1691 = vmatmul.msk.f32.vlgmr.msra.gmra.mxu1 %vm468_vm2, %v1010_v29  ;;  %v1166_v57 = vpop.permute.xlu0 %1165 }
 0x35d   :  { %1696 = vmatmul.msk.f32.gmra.mxu2 %vm468_vm2, %v1089_v0  ;;  %1700 = vmatmul.msk.f32.gmra.mxu3 %vm468_vm2, %v1166_v57 }
 0x35e   :  { %v604_v14 = vpop.f32.mrf.mxu3  ;;  %1859 = vset.pattern.permute.xlu1 %v1939_v11 }
 0x35f   :  { %v634_v51 = vadd.f32 %v633_v49, %v604_v14  ;;  %1075 = vperm.xlu1 %1859, %v1896_v7  }
 0x360   :  { %1860 = vset.pattern.permute.xlu2 %v1938_v10  ;;  %1863 = vset.pattern.permute.xlu0 %v1936_v40  ;;  %v2544_v40 = vpop.f32.mrf.mxu2 }
 0x361   :  { %1897 = vrcp.f32 %v634_v51  ;;  %1152 = vperm.xlu2 %1860, %v1896_v7  }
 0x364   :  { %1692 = vmatmul.msk.f32.gmra.mxu1 %vm468_vm2, %v1012_v4  ;;  %v1168_v54 = vpop.permute.xlu0 %1167 }
 0x365   :  { %1697 = vmatmul.msk.f32.gmra.mxu2 %vm468_vm2, %v1091_v42  ;;  %1701 = vmatmul.msk.f32.gmra.mxu3 %vm468_vm2, %v1168_v54 }
 0x367   :  { %v2539_v56 = vpop.eup %1897  ;;  %1861 = vset.pattern.permute.xlu1 %v1937_v9 }
 0x368   :  { %775 = vperm.xlu0 %1863, %v2539_v56   ;;  %1229 = vperm.xlu1 %1861, %v1896_v7  }
 0x369   :  { %1864 = vset.pattern.permute.xlu2 %v1935_v37  ;;  %v2554_v37 = vpop.f32.mrf.mxu2 }
 0x36a   :  { %852 = vperm.xlu2 %1864, %v2539_v56  }
 0x36c   :  { %1693 = vmatmul.msk.f32.gmra.mxu1 %vm468_vm2, %v1014_v53  ;;  %v1170_v8 = vpop.permute.xlu0 %1169 }
 0x36d   :  { %1698 = vmatmul.msk.f32.gmra.mxu2 %vm468_vm2, %v1093_v6  ;;  %1702 = vmatmul.msk.f32.gmra.mxu3 %vm468_vm2, %v1170_v8 }
 0x370   :  { %1868 = vset.pattern.permute.xlu0 %v1938_v10  ;;  %1865 = vset.pattern.permute.xlu1 %v1934_v36 }
 0x371   :  { %1156 = vperm.xlu0 %1868, %v2539_v56   ;;  %929 = vperm.xlu1 %1865, %v2539_v56   ;;  %v918_v39 = vpop.permute.xlu2 %917  ;;  %v2561_v10 = vpop.f32.mrf.mxu2 }
 0x372   :  { %1866 = vset.pattern.permute.xlu2 %v1940_v16 }
 0x373   :  { %1002 = vperm.xlu2 %1866, %v2539_v56  }
 0x374   :  { %1694 = vmatmul.msk.f32.gmra.mxu1 %vm468_vm2, %v1016_v59 }
 0x379   :  { %1867 = vset.pattern.permute.xlu1 %v1939_v11  ;;  %1870 = vset.pattern.permute.xlu0 %v1941_v18  ;;  %v2568_v16 = vpop.f32.mrf.mxu2 }
 0x37a   :  { %1079 = vperm.xlu1 %1867, %v2539_v56  }
 0x37b   :  { %1869 = vset.pattern.permute.xlu2 %v1937_v9  ;;  %v2566_v36 = vpop.permute.xlu2 %1067 }
 0x37c   :  { %1233 = vperm.xlu2 %1869, %v2539_v56  }
 0x382   :  { %v904_v21 = vpop.f32.mrf.mxu3  ;;  %1872 = vset.pattern.permute.xlu1 %v1941_v18 }
 0x383   :  { %v932_v44 = vmul.f32 %v918_v39, %v904_v21  ;;  %v827_v43 = vpop.f32.mrf.mxu2 }
 0x384   :  { %1871 = vset.pattern.permute.xlu2 %v1941_v18  ;;  %v977_v18 = vpop.f32.mrf.mxu0 }
 0x385   :  { %v750_v11 = vpop.f32.mrf.mxu1  ;;  %1276 = vrot.lane.b32.xlu0 %v932_v44, %s1944_s28  ;;  %v768_v61 = vpop.permute.xlu2 %767 }
 0x389   :  { %v764_v25 = vpop.permute.xlu1 %763 }
 0x38a   :  { %v778_v9 = vmul.f32 %v764_v25, %v750_v11  ;;  %v841_v62 = vpop.permute.xlu0 %840  ;;  %v907_v2 = vpop.f32.mrf.mxu3 }
 0x38b   :  { %v855_v34 = vmul.f32 %v841_v62, %v827_v43 }
 0x38c   :  { %1244 = vrot.lane.b32.xlu2 %v778_v9, %s1945_s12  ;;  %v980_v46 = vpop.f32.mrf.mxu0 }
 0x38d   :  { %1260 = vrot.lane.b32.xlu1 %v855_v34, %s1946_s19  ;;  %v753_v60 = vpop.f32.mrf.mxu1 }
 0x38e   :  { %v779_v12 = vmul.f32 %v768_v61, %v753_v60  ;;  %v922_v63 = vpop.permute.xlu2 %921 }
 0x38f   :  { %v933_v19 = vmul.f32 %v922_v63, %v907_v2 }
 0x390   :  { %1246 = vrot.lane.b32.xlu0 %v779_v12, %s1945_s12 }
 0x392   :  { %v991_v30 = vpop.permute.xlu1 %990  ;;  %v830_v20 = vpop.f32.mrf.mxu2 }
 0x393   :  { %v1005_v3 = vmul.f32 %v991_v30, %v977_v18  ;;  %v1222_v28 = vpop.permute.xlu0 %1221 }
 0x394   :  { %v983_v32 = vpop.f32.mrf.mxu0 }
 0x395   :  { %1278 = vrot.lane.b32.xlu1 %v933_v19, %s1944_s28  ;;  %1292 = vrot.lane.b32.xlu2 %v1005_v3, %s1943_s13 }
 0x397   :  { %v2578_v5 = vpop.permute.xlu2 %1148 }
 0x39b   :  { %v1145_v50 = vpop.permute.xlu1 %1144 }
 0x39c   :  { %v986_v3 = vpop.f32.mrf.mxu0 }
 0x39d   :  { %v1072_v29 = vpop.permute.xlu0 %1071 }
 0x39e   :  { %v910_v23 = vpop.f32.mrf.mxu3 }
 0x3a0   :  { %v2582_v17 = vpop.permute.xlu2 %688 }
 0x3a4   :  { %v2580_v15 = vpop.permute.xlu1 %683 }
 0x3a9   :  { %v772_v26 = vpop.permute.xlu2 %771 }
 0x3ad   :  { %v845_v22 = vpop.permute.xlu1 %844 }
 0x3ae   :  { %v856_v24 = vmul.f32 %v845_v22, %v830_v20 }
 0x3b0   :  { %v756_v27 = vpop.f32.mrf.mxu1  ;;  %1262 = vrot.lane.b32.xlu2 %v856_v24, %s1946_s19 }
 0x3b1   :  { %v780_v55 = vmul.f32 %v772_v26, %v756_v27 }
 0x3b2   :  { %v999_v31 = vpop.permute.xlu2 %998 }
 0x3b3   :  { %1248 = vrot.lane.b32.xlu1 %v780_v55, %s1945_s12  ;;  %v1007_v45 = vmul.f32 %v999_v31, %v983_v32  ;;  %v1416_v32 = vld [vmem:[%s2775_s7 + $0x38] sm:$0xff] }
 0x3b4   :  { %1441 = vmatpush.msrb.mxu0 %v1416_v32 }
 0x3b6   :  { %v995_v58 = vpop.permute.xlu1 %994 }
 0x3b7   :  { %v1006_v47 = vmul.f32 %v995_v58, %v980_v46  ;;  %v833_v38 = vpop.f32.mrf.mxu2 }
 0x3b8   :  { %v913_v4 = vpop.f32.mrf.mxu3 }
 0x3b9   :  { %1294 = vrot.lane.b32.xlu0 %v1006_v47, %s1943_s13 }
 0x3ba   :  { %v759_v48 = vpop.f32.mrf.mxu1 }
 0x3bb   :  { %v1153_v42 = vpop.permute.xlu2 %1152 }
 0x3bf   :  { %v1226_v1 = vpop.permute.xlu1 %1225 }
 0x3c1   :  { %v926_v33 = vpop.permute.xlu0 %925  ;;  %1296 = vrot.lane.b32.xlu0 %v1007_v45, %s1943_s13  ;;  %v1208_v53 = vpop.f32.mrf.mxu3 }
 0x3c2   :  { %v934_v35 = vmul.f32 %v926_v33, %v910_v23  ;;  %v1236_v59 = vmul.f32 %v1222_v28, %v1208_v53  ;;  %v1414_v23 = vld [vmem:[%s2775_s7 + $0x28] sm:$0xff]  ;;  %v1413_v33 = vld [vmem:[%s2775_s7 + $0x20] sm:$0xff] }
 0x3c4   :  { %1280 = vrot.lane.b32.xlu1 %v934_v35, %s1944_s28  ;;  %v853_v21 = vpop.permute.xlu2 %852 }
 0x3c8   :  { %v849_v52 = vpop.permute.xlu1 %848 }
 0x3c9   :  { %v857_v7 = vmul.f32 %v849_v52, %v833_v38  ;;  %v1412_v52 = vld [vmem:[%s2775_s7 + $0x18] sm:$0xff] }
 0x3ca   :  { %v2593_v54 = vpop.permute.xlu0 %693 }
 0x3cb   :  { %1264 = vrot.lane.b32.xlu2 %v857_v7, %s1946_s19 }
 0x3cd   :  { %v1003_v19 = vpop.permute.xlu2 %1002 }
 0x3d0   :  { %v836_v41 = vpop.f32.mrf.mxu2 }
 0x3d1   :  { %v1076_v0 = vpop.permute.xlu1 %1075  ;;  %v858_v44 = vmul.f32 %v853_v21, %v836_v41  ;;  %v1411_v41 = vld [vmem:[%s2775_s7 + $0x10] sm:$0xff] }
 0x3d6   :  { %v1234_v22 = vpop.permute.xlu2 %1233 }
 0x3d8   :  { %v1131_v13 = vpop.f32.mrf.mxu2 }
 0x3d9   :  { %v1054_v57 = vpop.f32.mrf.mxu1  ;;  %v1159_v49 = vmul.f32 %v1145_v50, %v1131_v13  ;;  %v1008_v50 = vmul.f32 %v1003_v19, %v986_v3 }
 0x3da   :  { %v1082_v14 = vmul.f32 %v2566_v36, %v1054_v57  ;;  %v1230_v51 = vpop.permute.xlu1 %1229  ;;  %v776_v36 = vpop.permute.xlu0 %775  ;;  %v701_v57 = vmul.f32 %v2580_v15, %v2544_v40 }
 0x3db   :  { %1324 = vrot.lane.b32.xlu0 %v1159_v49, %s1947_s20  ;;  %v781_v61 = vmul.f32 %v776_v36, %v759_v48  ;;  %v1410_v48 = vld [vmem:[%s2775_s7 + $0x8] sm:$0xff] }
 0x3dc   :  { %1308 = vrot.lane.b32.xlu1 %v1082_v14, %s1948_s21 }
 0x3e0   :  { %v1134_v43 = vpop.f32.mrf.mxu2 }
 0x3e1   :  { %v1057_v6 = vpop.f32.mrf.mxu1  ;;  %v1160_v34 = vmul.f32 %v2578_v5, %v1134_v43 }
 0x3e2   :  { %v1083_v25 = vmul.f32 %v1072_v29, %v1057_v6 }
 0x3e3   :  { %v930_v8 = vpop.permute.xlu1 %929  ;;  %698 = vperm.xlu0 %1870, %v2539_v56   ;;  %v1211_v56 = vpop.f32.mrf.mxu3 }
 0x3e4   :  { %1340 = vrot.lane.b32.xlu1 %v1236_v59, %s1949_s22  ;;  %v935_v39 = vmul.f32 %v930_v8, %v913_v4  ;;  %v1237_v12 = vmul.f32 %v1226_v1, %v1211_v56  ;;  %v1157_v27 = vpop.permute.xlu0 %1156  ;;  %v1415_v1 = vld [vmem:[%s2775_s7 + $0x30] sm:$0xff] }
 0x3e5   :  { %1442 = vmatpush.msrb.mxu0 %v1415_v1 }
 0x3e6   :  { %1282 = vrot.lane.b32.xlu2 %v935_v39, %s1944_s28  ;;  %v1245_v55 = vpop.permute.xlu2 %1244 }
 0x3e7   :  { %1443 = vmatpush.msrb.mxu0 %v1414_v23  ;;  %v1353_v49 = vsel %vm1352_vm4, %v701_v57, %v1245_v55  ;;  %v1470_v57 = vld [vmem:[%s2776_s9 + $0x40] sm:$0xff] }
 0x3e8   :  { %v1137_v63 = vpop.f32.mrf.mxu2 }
 0x3e9   :  { %v1060_v11 = vpop.f32.mrf.mxu1  ;;  %v1161_v18 = vmul.f32 %v1153_v42, %v1137_v63  ;;  %1444 = vmatpush.msrb.mxu0 %v1413_v33 }
 0x3ea   :  { %v1084_v2 = vmul.f32 %v1076_v0, %v1060_v11  ;;  %v1409_v0 = vld [vmem:[%s2775_s7] sm:$0xff] }
 0x3eb   :  { %1266 = vrot.lane.b32.xlu0 %v858_v44, %s1946_s19  ;;  %v1214_v30 = vpop.f32.mrf.mxu3  ;;  %1445 = vmatpush.msrb.mxu0 %v1412_v52 }
 0x3ec   :  { %1250 = vrot.lane.b32.xlu1 %v781_v61, %s1945_s12  ;;  %v1080_v9 = vpop.permute.xlu1 %1079  ;;  %v1238_v5 = vmul.f32 %v1230_v51, %v1214_v30  ;;  %v702_v61 = vmul.f32 %v2582_v17, %v2554_v37 }
 0x3ed   :  { %1446 = vmatpush.msrb.mxu0 %v1411_v41 }
 0x3ee   :  { %1310 = vrot.lane.b32.xlu2 %v1083_v25, %s1948_s21 }
 0x3ef   :  { %v1293_v58 = vpop.permute.xlu2 %1292  ;;  %1447 = vmatpush.msrb.mxu0 %v1410_v48 }
 0x3f0   :  { %v1140_v24 = vpop.f32.mrf.mxu2 }
 0x3f1   :  { %v1063_v62 = vpop.f32.mrf.mxu1  ;;  %v1162_v28 = vmul.f32 %v1157_v27, %v1140_v24  ;;  %1448 = vmatpush.msrb.mxu0 %v1409_v0  ;;  %v1476_v27 = vld [vmem:[%s2776_s9 + $0x70] sm:$0xff]  ;;  %v1471_v0 = vld [vmem:[%s2776_s9 + $0x48] sm:$0xff] }
 0x3f2   :  { %v1085_v60 = vmul.f32 %v1080_v9, %v1063_v62 }
 0x3f3   :  { %v1217_v20 = vpop.f32.mrf.mxu3 }
 0x3f4   :  { %1326 = vrot.lane.b32.xlu1 %v1160_v34, %s1947_s20  ;;  %1314 = vrot.lane.b32.xlu0 %v1085_v60, %s1948_s21  ;;  %v1239_v26 = vmul.f32 %v1234_v22, %v1217_v20  ;;  %v703_v34 = vmul.f32 %v2593_v54, %v2561_v10 }
 0x3f6   :  { %1342 = vrot.lane.b32.xlu2 %v1237_v12, %s1949_s22 }
 0x3f7   :  { %v1277_v47 = vpop.permute.xlu0 %1276 }
 0x3fc   :  { %1328 = vrot.lane.b32.xlu1 %v1161_v18, %s1947_s20 }
 0x3fe   :  { %1312 = vrot.lane.b32.xlu2 %v1084_v2, %s1948_s21 }
 0x3ff   :  { %v1261_v46 = vpop.permute.xlu1 %1260 }
 0x400   :  { %v1357_v51 = vsel %vm52_vm0, %v1353_v49, %v1261_v46 }
 0x401   :  { %v1362_v53 = vsel %vm1361_vm5, %v1357_v51, %v1277_v47  ;;  %v1469_v51 = vld [vmem:[%s2776_s9 + $0x38] sm:$0xff] }
 0x402   :  { %v1247_v45 = vpop.permute.xlu0 %1246  ;;  %v1366_v59 = vsel %vm468_vm2, %v1362_v53, %v1293_v58 }
 0x403   :  { %v1354_v43 = vsel %vm1352_vm4, %v702_v61, %v1247_v45  ;;  %v1474_v45 = vld [vmem:[%s2776_s9 + $0x60] sm:$0xff] }
 0x404   :  { %1298 = vrot.lane.b32.xlu1 %v1008_v50, %s1943_s13 }
 0x406   :  { %1344 = vrot.lane.b32.xlu2 %v1238_v5, %s1949_s22 }
 0x407   :  { %v1279_v29 = vpop.permute.xlu1 %1278 }
 0x40a   :  { %v1263_v31 = vpop.permute.xlu2 %1262 }
 0x40b   :  { %v1358_v56 = vsel %vm52_vm0, %v1354_v43, %v1263_v31 }
 0x40c   :  { %1346 = vrot.lane.b32.xlu1 %v1239_v26, %s1949_s22  ;;  %v1363_v60 = vsel %vm1361_vm5, %v1358_v56, %v1279_v29  ;;  %v1477_v26 = vld [vmem:[%s2776_s9 + $0x78] sm:$0xff]  ;;  %v1475_v29 = vld [vmem:[%s2776_s9 + $0x68] sm:$0xff] }
 0x40d   :  { %1478 = vmatpush.msrb.mxu1 %v1477_v26  ;;  %v1463_v56 = vld [vmem:[%s2776_s9 + $0x8] sm:$0xff] }
 0x40e   :  { %1330 = vrot.lane.b32.xlu2 %v1162_v28, %s1947_s20 }
 0x40f   :  { %1479 = vmatpush.msrb.mxu1 %v1476_v27 }
 0x411   :  { %1480 = vmatpush.msrb.mxu1 %v1475_v29 }
 0x413   :  { %1481 = vmatpush.msrb.mxu1 %v1474_v45 }
 0x425   :  { %v1249_v35 = vpop.permute.xlu1 %1248  ;;  %v1265_v38 = vpop.permute.xlu2 %1264 }
 0x426   :  { %v1355_v2 = vsel %vm1352_vm4, %v703_v34, %v1249_v35  ;;  %v1473_v35 = vld [vmem:[%s2776_s9 + $0x58] sm:$0xff] }
 0x427   :  { %v1359_v10 = vsel %vm52_vm0, %v1355_v2, %v1265_v38  ;;  %1482 = vmatpush.msrb.mxu1 %v1473_v35  ;;  %v1925_v35 = vld [vmem:[%s2773_s1 + $0x10] sm:$0xff] }
 0x42b   :  { %v1295_v7 = vpop.permute.xlu0 %1294 }
 0x42c   :  { %v1367_v12 = vsel %vm468_vm2, %v1363_v60, %v1295_v7  ;;  %v1472_v7 = vld [vmem:[%s2776_s9 + $0x50] sm:$0xff] }
 0x42d   :  { %1483 = vmatpush.msrb.mxu1 %v1472_v7 }
 0x42f   :  { %1484 = vmatpush.msrb.mxu1 %v1471_v0 }
 0x431   :  { %1485 = vmatpush.msrb.mxu1 %v1470_v57 }
 0x433   :  { %v1297_v14 = vpop.permute.xlu0 %1296  ;;  %1486 = vmatpush.msrb.mxu1 %v1469_v51 }
 0x436   :  { %v1281_v4 = vpop.permute.xlu1 %1280 }
 0x437   :  { %v1364_v50 = vsel %vm1361_vm5, %v1359_v10, %v1281_v4 }
 0x438   :  { %v1368_v20 = vsel %vm468_vm2, %v1364_v50, %v1297_v14 }
 0x440   :  { %v2635_v13 = vpop.permute.xlu2 %1282 }
 0x448   :  { %v1311_v6 = vpop.permute.xlu2 %1310 }
 0x449   :  { %v1372_v37 = vsel %vm1370_vm6, %v1367_v12, %v1311_v6 }
 0x44d   :  { %v1325_v39 = vpop.permute.xlu0 %1324 }
 0x44e   :  { %v1309_v42 = vpop.permute.xlu1 %1308 }
 0x44f   :  { %v1371_v8 = vsel %vm1370_vm6, %v1366_v59, %v1309_v42 }
 0x450   :  { %v1376_v40 = vsel %vm1375_vm7, %v1371_v8, %v1325_v39  ;;  %v1343_v11 = vpop.permute.xlu2 %1342  ;;  %v1468_v8 = vld [vmem:[%s2776_s9 + $0x30] sm:$0xff] }
 0x451   :  { %1487 = vmatpush.msrb.mxu1 %v1468_v8 }
 0x455   :  { %v699_v17 = vpop.permute.xlu0 %698 }
 0x456   :  { %v1341_v15 = vpop.permute.xlu1 %1340  ;;  %v704_v28 = vmul.f32 %v699_v17, %v2568_v16 }
 0x457   :  { %v1381_v36 = vsel %vm1380_vm8, %v1376_v40, %v1341_v15  ;;  %v1467_v15 = vld [vmem:[%s2776_s9 + $0x28] sm:$0xff] }
 0x458   :  { %v1389_v21 = vmin.f32 %v1381_v36, 0.0  ;;  %vm1385_vm9 = vcmp.gt.f32.partialorder %v1381_v36, 0.0  ;;  %v1313_v18 = vpop.permute.xlu2 %1312  ;;  %1488 = vmatpush.msrb.mxu1 %v1467_v15 }
 0x459   :  { %v1373_v22 = vsel %vm1370_vm6, %v1368_v20, %v1313_v18 }
 0x45a   :  { %v1393_v44 = vmul.f32 1.442695, %v1389_v21  ;;  %v1466_v21 = vld [vmem:[%s2776_s9 + $0x20] sm:$0xff] }
 0x45b   :  { %1489 = vmatpush.msrb.mxu1 %v1466_v21 }
 0x45c   :  { %1899 = vpow2.f32 %v1393_v44  ;;  %v1465_v44 = vld [vmem:[%s2776_s9 + $0x18] sm:$0xff] }
 0x45d   :  { %v1267_v58 = vpop.permute.xlu0 %1266  ;;  %1490 = vmatpush.msrb.mxu1 %v1465_v44 }
 0x45e   :  { %v1251_v25 = vpop.permute.xlu1 %1250 }
 0x45f   :  { %v1356_v31 = vsel %vm1352_vm4, %v704_v28, %v1251_v25  ;;  %v1923_v28 = vld [vmem:[%s2773_s1 + $0x8] sm:$0xff] }
 0x460   :  { %v1345_v55 = vpop.permute.xlu2 %1344  ;;  %v1360_v23 = vsel %vm52_vm0, %v1356_v31, %v1267_v58  ;;  %v1924_v31 = vld [vmem:[%s2773_s1] sm:$0xff] }
 0x461   :  { %v1365_v41 = vsel %vm1361_vm5, %v1360_v23, %v2635_v13 }
 0x462   :  { %v1900_v9 = vpop.eup %1899 }
 0x463   :  { %v1703_v62 = vadd.f32 -1.0, %v1900_v9  ;;  %v1462_v9 = vld [vmem:[%s2776_s9] sm:$0xff] }
 0x465   :  { %v1405_v63 = vsel %vm1385_vm9, %v1381_v36, %v1703_v62  ;;  %v1874_v62 = vld [vmem:[%s2774_s8] ss:$0 sm:$0xff] }
 0x466   :  { %1707 = vmatmul.msk.f32.vlgmr.msrb.gmra.mxu0 %vm102_vm1, %v1405_v63  ;;  %v1327_v30 = vpop.permute.xlu1 %1326  ;;  %v1315_v4 = vpop.permute.xlu0 %1314 }
 0x467   :  { %v1377_v19 = vsel %vm1375_vm7, %v1372_v37, %v1327_v30  ;;  %v1507_v30 = vld [vmem:[%s2777_s10] sm:$0x1] }
 0x468   :  { %v1382_v3 = vsel %vm1380_vm8, %v1377_v19, %v1343_v11  ;;  %v1331_v42 = vpop.permute.xlu2 %1330  ;;  %v1464_v11 = vld [vmem:[%s2776_s9 + $0x10] sm:$0xff] }
 0x469   :  { %v1390_v54 = vmin.f32 %v1382_v3, 0.0  ;;  %vm1386_vm10 = vcmp.gt.f32.partialorder %v1382_v3, 0.0  ;;  %1491 = vmatpush.msrb.mxu1 %v1464_v11 }
 0x46b   :  { %v1395_v5 = vmul.f32 1.442695, %v1390_v54  ;;  %1492 = vmatpush.msrb.mxu1 %v1463_v56 }
 0x46d   :  { %1901 = vpow2.f32 %v1395_v5  ;;  %1493 = vmatpush.msrb.mxu1 %v1462_v9 }
 0x46e   :  { %v1329_v24 = vpop.permute.xlu1 %1328 }
 0x46f   :  { %v1378_v46 = vsel %vm1375_vm7, %v1373_v22, %v1329_v24 }
 0x470   :  { %v1383_v47 = vsel %vm1380_vm8, %v1378_v46, %v1345_v55 }
 0x471   :  { %v1391_v32 = vmin.f32 %v1383_v47, 0.0  ;;  %vm1387_vm11 = vcmp.gt.f32.partialorder %v1383_v47, 0.0 }
 0x473   :  { %v1902_v16 = vpop.eup %1901  ;;  %v1397_v1 = vmul.f32 1.442695, %v1391_v32 }
 0x474   :  { %v1704_v33 = vadd.f32 -1.0, %v1902_v16 }
 0x475   :  { %1903 = vpow2.f32 %v1397_v1 }
 0x476   :  { %v1299_v38 = vpop.permute.xlu1 %1298  ;;  %v1406_v52 = vsel %vm1386_vm10, %v1382_v3, %v1704_v33 }
 0x477   :  { %1708 = vmatmul.msk.f32.gmra.mxu0 %vm102_vm1, %v1406_v52  ;;  %v1369_v48 = vsel %vm468_vm2, %v1365_v41, %v1299_v38 }
 0x478   :  { %v1374_v14 = vsel %vm1370_vm6, %v1369_v48, %v1315_v4  ;;  %v1926_v4 = vld [vmem:[%s2773_s1 + $0x18] sm:$0xff] }
 0x479   :  { %v1379_v6 = vsel %vm1375_vm7, %v1374_v14, %v1331_v42 }
 0x47b   :  { %v1904_v49 = vpop.eup %1903 }
 0x47c   :  { %v1705_v13 = vadd.f32 -1.0, %v1904_v49 }
 0x47e   :  { %v1347_v53 = vpop.permute.xlu1 %1346  ;;  %v1407_v59 = vsel %vm1387_vm11, %v1383_v47, %v1705_v13 }
 0x47f   :  { %v1384_v39 = vsel %vm1380_vm8, %v1379_v6, %v1347_v53  ;;  %1709 = vmatmul.msk.f32.gmra.mxu0 %vm102_vm1, %v1407_v59 }
 0x480   :  { %v1392_v40 = vmin.f32 %v1384_v39, 0.0  ;;  %vm1388_vm12 = vcmp.gt.f32.partialorder %v1384_v39, 0.0 }
 0x482   :  { %v1399_v36 = vmul.f32 1.442695, %v1392_v40 }
 0x484   :  { %1905 = vpow2.f32 %v1399_v36 }
 0x48a   :  { %v1906_v61 = vpop.eup %1905 }
 0x48b   :  { %v1706_v25 = vadd.f32 -1.0, %v1906_v61 }
 0x48d   :  { %v1408_v43 = vsel %vm1388_vm12, %v1384_v39, %v1706_v25 }
 0x48e   :  { %1710 = vmatmul.msk.f32.gmra.mxu0 %vm102_vm1, %v1408_v43 }
 0x4e3   :  { %v1450_v34 = vpop.f32.mrf.mxu0 }
 0x4e4   :  { %v1451_v60 = vadd.f32 %v1874_v62, %v1450_v34 }
 0x4e6   :  { %1494 = vmatmul.f32.vlgmr.msrb.gmra.mxu1 %v1451_v60 }
 0x4f4   :  { %v1453_v12 = vpop.f32.mrf.mxu0 }
 0x4f5   :  { %v1454_v63 = vadd.f32 %v1874_v62, %v1453_v12 }
 0x4f7   :  { %1497 = vmatmul.f32.gmra.mxu1 %v1454_v63 }
 0x4fc   :  { %v1456_v18 = vpop.f32.mrf.mxu0 }
 0x4fd   :  { %v1457_v2 = vadd.f32 %v1874_v62, %v1456_v18 }
 0x4ff   :  { %1500 = vmatmul.f32.gmra.mxu1 %v1457_v2 }
 0x50b   :  { %v1459_v37 = vpop.f32.mrf.mxu0 }
 0x50c   :  { %v1460_v17 = vadd.f32 %v1874_v62, %v1459_v37 }
 0x50e   :  { %1503 = vmatmul.f32.gmra.mxu1 %v1460_v17  ;;  %1520 = vmatpush.xpose.msrb.mxu2 %v1460_v17 }
 0x512   :  { %1521 = vmatpush.xpose.msrb.mxu2 %v1457_v2 }
 0x516   :  { %1522 = vmatpush.xpose.msrb.mxu2 %v1454_v63 }
 0x51a   :  { %1523 = vmatpush.xpose.msrb.mxu2 %v1451_v60 }
 0x51d   :  { %1524 = vmatmul.f32.vlgmr.msrb.gmra.mxu2 %v1507_v30 }
 0x51e   :  { %1633 = vmatpush.msra.mxu2 %v1460_v17 }
 0x520   :  { %1634 = vmatpush.msra.mxu2 %v1457_v2 }
 0x522   :  { %1635 = vmatpush.msra.mxu2 %v1454_v63 }
 0x524   :  { %1636 = vmatpush.msra.mxu2 %v1451_v60 }
 0x563   :  { %v1495_v19 = vpop.f32.mrf.mxu1 }
 0x564   :  { %1530 = vperm.xlu0 %1870, %v1495_v19  }
 0x574   :  { %v1498_v3 = vpop.f32.mrf.mxu1 }
 0x575   :  { %1535 = vperm.xlu2 %1871, %v1498_v3  }
 0x57c   :  { %v1501_v10 = vpop.f32.mrf.mxu1 }
 0x57d   :  { %1540 = vperm.xlu1 %1872, %v1501_v10  }
 0x58b   :  { %v1504_v54 = vpop.f32.mrf.mxu1 }
 0x58c   :  { %1545 = vperm.xlu0 %1870, %v1504_v54  }
 0x5a0   :  { %v1525_v50 = vpop.f32.mrf.mxu2 }
 0x5a1   :  { %v1548_v5 = vperm.slane %v1525_v50, 0 }
 0x5cf   :  { %v1536_v20 = vpop.permute.xlu2 %1535 }
 0x5d0   :  { %v1550_v22 = vadd.f32 %v1548_v5, %v1536_v20 }
 0x5d2   :  { %v1554_v24 = vmul.f32 0.01, %v1550_v22 }
 0x5d4   :  { %v1558_v26 = vmax.f32 %v1550_v22, %v1554_v24 }
 0x5d6   :  { %v1531_v27 = vpop.permute.xlu0 %1530  ;;  %v1562_v55 = vadd.f32 %v1923_v28, %v1558_v26 }
 0x5d7   :  { %v1549_v46 = vadd.f32 %v1548_v5, %v1531_v27 }
 0x5d8   :  { %v1568_v58 = vsel %vm468_vm2, %v1562_v55, -inf }
 0x5d9   :  { %v1553_v47 = vmul.f32 0.01, %v1549_v46  ;;  %1569 = vmax.xlane.f32.xlu1 %v1568_v58 }
 0x5db   :  { %v1557_v29 = vmax.f32 %v1549_v46, %v1553_v47 }
 0x5dd   :  { %v1561_v32 = vadd.f32 %v1924_v31, %v1557_v29 }
 0x5df   :  { %v1565_v45 = vsel %vm468_vm2, %v1561_v32, -inf }
 0x5e0   :  { %1566 = vmax.xlane.f32.xlu2 %v1565_v45 }
 0x5ef   :  { %v1541_v16 = vpop.permute.xlu1 %1540 }
 0x5f0   :  { %v1551_v1 = vadd.f32 %v1548_v5, %v1541_v16 }
 0x5f2   :  { %v1555_v23 = vmul.f32 0.01, %v1551_v1 }
 0x5f4   :  { %v1559_v33 = vmax.f32 %v1551_v1, %v1555_v23 }
 0x5f6   :  { %v1563_v38 = vadd.f32 %v1925_v35, %v1559_v33 }
 0x5f8   :  { %v1571_v52 = vsel %vm468_vm2, %v1563_v38, -inf }
 0x5f9   :  { %1572 = vmax.xlane.f32.xlu0 %v1571_v52 }
 0x5fe   :  { %v1546_v7 = vpop.permute.xlu0 %1545 }
 0x5ff   :  { %v1552_v41 = vadd.f32 %v1548_v5, %v1546_v7 }
 0x601   :  { %v1556_v48 = vmul.f32 0.01, %v1552_v41 }
 0x603   :  { %v1560_v0 = vmax.f32 %v1552_v41, %v1556_v48 }
 0x605   :  { %v1564_v57 = vadd.f32 %v1926_v4, %v1560_v0 }
 0x607   :  { %v1574_v49 = vsel %vm468_vm2, %v1564_v57, -inf }
 0x608   :  { %1575 = vmax.xlane.f32.xlu2 %v1574_v49 }
 0x64c   :  { %v1570_v14 = vpop.xlane.xlu1 %1569 }
 0x64d   :  { %v1578_v13 = vsub.f32 %v1562_v55, %v1570_v14 }
 0x64f   :  { %v1583_v51 = vmul.f32 1.442695, %v1578_v13 }
 0x651   :  { %1907 = vpow2.f32 %v1583_v51 }
 0x653   :  { %v1567_v42 = vpop.xlane.xlu2 %1566 }
 0x654   :  { %v1577_v53 = vsub.f32 %v1561_v32, %v1567_v42 }
 0x656   :  { %v1581_v6 = vmul.f32 1.442695, %v1577_v53 }
 0x657   :  { %v1908_v59 = vpop.eup %1907 }
 0x658   :  { %1909 = vpow2.f32 %v1581_v6  ;;  %v1592_v8 = vsel %vm468_vm2, %v1908_v59, 0.0 }
 0x659   :  { %1593 = vadd.xlane.f32.xlu0 %v1592_v8 }
 0x65e   :  { %v1910_v39 = vpop.eup %1909 }
 0x65f   :  { %v1589_v40 = vsel %vm468_vm2, %v1910_v39, 0.0 }
 0x660   :  { %1590 = vadd.xlane.f32.xlu1 %v1589_v40 }
 0x66c   :  { %v1573_v15 = vpop.xlane.xlu0 %1572 }
 0x66d   :  { %v1579_v36 = vsub.f32 %v1563_v38, %v1573_v15 }
 0x66f   :  { %v1585_v21 = vmul.f32 1.442695, %v1579_v36 }
 0x671   :  { %1911 = vpow2.f32 %v1585_v21 }
 0x677   :  { %v1912_v44 = vpop.eup %1911 }
 0x678   :  { %v1595_v11 = vsel %vm468_vm2, %v1912_v44, 0.0 }
 0x679   :  { %1596 = vadd.xlane.f32.xlu2 %v1595_v11 }
 0x67b   :  { %v1576_v61 = vpop.xlane.xlu2 %1575 }
 0x67c   :  { %v1580_v25 = vsub.f32 %v1564_v57, %v1576_v61 }
 0x67e   :  { %v1587_v43 = vmul.f32 1.442695, %v1580_v25 }
 0x680   :  { %1913 = vpow2.f32 %v1587_v43 }
 0x686   :  { %v1914_v56 = vpop.eup %1913 }
 0x687   :  { %v1598_v9 = vsel %vm468_vm2, %v1914_v56, 0.0 }
 0x688   :  { %1599 = vadd.xlane.f32.xlu1 %v1598_v9 }
 0x6cc   :  { %v1594_v34 = vpop.xlane.xlu0 %1593 }
 0x6d3   :  { %v1591_v62 = vpop.xlane.xlu1 %1590 }
 0x6d4   :  { %1915 = vrcp.f32 %v1591_v62 }
 0x6d5   :  { %1917 = vrcp.f32 %v1594_v34 }
 0x6da   :  { %v1916_v60 = vpop.eup %1915 }
 0x6db   :  { %v1605_v12 = vmul.f32 %v1916_v60, %v1910_v39  ;;  %v1918_v63 = vpop.eup %1917 }
 0x6dc   :  { %v1606_v18 = vmul.f32 %v1918_v63, %v1908_v59 }
 0x6dd   :  { %1711 = vmatmul.msk.f32.vlgmr.msra.gmra.mxu2 %vm468_vm2, %v1605_v12 }
 0x6e5   :  { %1712 = vmatmul.msk.f32.gmra.mxu2 %vm468_vm2, %v1606_v18 }
 0x6ec   :  { %v1597_v2 = vpop.xlane.xlu2 %1596 }
 0x6ed   :  { %1919 = vrcp.f32 %v1597_v2 }
 0x6f3   :  { %v1920_v37 = vpop.eup %1919 }
 0x6f4   :  { %v1607_v17 = vmul.f32 %v1920_v37, %v1912_v44 }
 0x6f6   :  { %1713 = vmatmul.msk.f32.gmra.mxu2 %vm468_vm2, %v1607_v17 }
 0x6fb   :  { %v1600_v30 = vpop.xlane.xlu1 %1599 }
 0x6fc   :  { %1921 = vrcp.f32 %v1600_v30 }
 0x702   :  { %v1922_v19 = vpop.eup %1921 }
 0x703   :  { %v1608_v3 = vmul.f32 %v1922_v19, %v1914_v56 }
 0x705   :  { %1714 = vmatmul.msk.f32.gmra.mxu2 %vm468_vm2, %v1608_v3 }
 0x760   :  { %v1638_v10 = vpop.f32.mrf.mxu2 }
 0x761   :  { %1650 = vst [vmem:[%s2778_s11] sm:$0xff] %v1638_v10 }
 0x768   :  { %v1641_v54 = vpop.f32.mrf.mxu2 }
 0x769   :  { %1651 = vst [vmem:[%s2778_s11 + $0x8] sm:$0xff] %v1641_v54 }
 0x779   :  { %v1644_v50 = vpop.f32.mrf.mxu2 }
 0x77a   :  { %1652 = vst [vmem:[%s2778_s11 + $0x10] sm:$0xff] %v1644_v50 }
 0x788   :  { %v1647_v5 = vpop.f32.mrf.mxu2 }
 0x789   :  { %1653 = vst [vmem:[%s2778_s11 + $0x18] sm:$0xff] %v1647_v5 }

</bundles_post_ra>
